<compile_context>
chip_gen: v7x
topology: tpu7x:2x2x1
jax: 0.10.0
libtpu: 0.0.40
codegen_flags: <defaults>
</compile_context>

<pallas_src>
import jax
import jax.numpy as jnp
from jax.experimental import pallas as pl
from jax.experimental.pallas import tpu as pltpu

NUM_HEAD = 6
LN_EPS = 1e-5
NEG_INF = -1e30


# ----------------------------------------------------------------------------
# Single fused kernel: QKV proj -> .view relayout -> per-head attention ->
# reverse .view -> out-proj + residual -> FFN + residual -> LayerNorm
# ----------------------------------------------------------------------------
def _encoder_kernel(x_ref, e_ref, et_ref, sel_ref, col_ref, colt_ref, am_ref,
                    wq_ref, bq_ref, wk_ref, bk_ref, wv_ref, bv_ref,
                    wo_ref, bo_ref, w1_ref, b1_ref, w2_ref, b2_ref,
                    g_ref, beta_ref, o_ref):
    f32 = jnp.float32
    x = x_ref[...]        # (R, D)   R = B*L token rows
    e = e_ref[...]        # (K, R)   0/1: flat-view row k <- token row k//NUM_HEAD
    sel = sel_ref[...]    # (K, D)   0/1: keep column block (k % NUM_HEAD) only
    col = col_ref[...]    # (D, dh)  0/1: sum dh-wide lane blocks down to dh lanes

    # forward .view relayout, step 1: repeat each token row NUM_HEAD times
    x_rep = jnp.dot(e, x, preferred_element_type=f32)                 # (K, D)

    def project_view(w_ref, b_ref):
        # project at K rows, then pick the dh-wide column block for this flat row
        p = jnp.dot(x_rep, w_ref[...], preferred_element_type=f32) + b_ref[...]
        return jnp.dot(p * sel, col, preferred_element_type=f32)      # (K, dh)

    qf = project_view(wq_ref, bq_ref)   # softmax scale pre-folded into wq/bq
    kf = project_view(wk_ref, bk_ref)
    vf = project_view(wv_ref, bv_ref)

    # block-diagonal (per pseudo-batch head) scores; am is 0 / -1e30 additive mask
    s = jnp.einsum('kd,nd->kn', qf, kf, preferred_element_type=f32) + am_ref[...]
    s = s - jnp.max(s, axis=-1, keepdims=True)
    p = jnp.exp(s)                      # masked entries underflow to exactly 0
    p = p / jnp.sum(p, axis=-1, keepdims=True)
    ctx = jnp.dot(p, vf, preferred_element_type=f32)                  # (K, dh)

    # reverse .view relayout: (K, dh) -> (R, D) via lane-tile + mask + group-sum
    ctx_rep = jnp.dot(ctx, colt_ref[...], preferred_element_type=f32)            # (K, D)
    ctx2d = jnp.dot(et_ref[...], ctx_rep * sel, preferred_element_type=f32)      # (R, D)

    # MHA output projection + residual (dropout = identity, no LayerNorm here)
    a = jnp.dot(ctx2d, wo_ref[...], preferred_element_type=f32) + bo_ref[...] + x

    # Position-wise feed-forward + residual + LayerNorm
    h = jnp.maximum(jnp.dot(a, w1_ref[...], preferred_element_type=f32) + b1_ref[...], 0.0)
    f = jnp.dot(h, w2_ref[...], preferred_element_type=f32) + b2_ref[...] + a
    mu = jnp.mean(f, axis=-1, keepdims=True)
    var = jnp.mean((f - mu) ** 2, axis=-1, keepdims=True)
    y = (f - mu) * jax.lax.rsqrt(var + LN_EPS)
    o_ref[...] = (y * g_ref[...] + beta_ref[...]).astype(o_ref.dtype)


def _full_spec(a):
    zeros = (0,) * a.ndim
    return pl.BlockSpec(a.shape, lambda i, z=zeros: z)


def encoder_forward(x, pp):
    B, L, D = x.shape
    R = B * L
    x2d = x.reshape(R, D)   # contiguous, free
    args = (x2d, pp["E"], pp["ET"], pp["SEL"], pp["COL"], pp["COLT"], pp["AM"],
            pp["wq_t"], pp["bq"], pp["wk_t"], pp["bk"], pp["wv_t"], pp["bv"],
            pp["wo_t"], pp["bo"], pp["w1_t"], pp["b1"], pp["w2_t"], pp["b2"],
            pp["ln_g"], pp["ln_b"])
    out2d = pl.pallas_call(
        _encoder_kernel,
        out_shape=jax.ShapeDtypeStruct((R, D), x.dtype),
        grid=(1,),
        in_specs=[_full_spec(a) for a in args],
        out_specs=pl.BlockSpec((R, D), lambda i: (0, 0)),
        compiler_params=pltpu.CompilerParams(dimension_semantics=("arbitrary",)),
    )(*args)
    return out2d.reshape(B, L, D)


# ----------------------------------------------------------------------------
# One-time parameter / constant preparation (hoisted out of the forward pass)
# ----------------------------------------------------------------------------
def prepare_params(p, batch, seq_len):
    D = p["wq"].shape[0]
    dh = D // NUM_HEAD
    scale = float(dh) ** (-0.5)
    R = batch * seq_len            # source token rows
    K = R * NUM_HEAD               # flat .view rows (= B * num_head * L)

    k = jnp.arange(K)
    r_of_k = k // NUM_HEAD         # token row feeding flat row k
    m_of_k = k % NUM_HEAD          # dh-wide column block of that token
    head_of_k = k // seq_len       # pseudo-batch (b*num_head + h) index
    d_col = jnp.arange(D)

    E = (r_of_k[:, None] == jnp.arange(R)[None, :]).astype(jnp.float32)          # (K, R)
    SEL = (m_of_k[:, None] == (d_col[None, :] // dh)).astype(jnp.float32)        # (K, D)
    COL = ((d_col[:, None] % dh) == jnp.arange(dh)[None, :]).astype(jnp.float32)  # (D, dh)
    AM = jnp.where(head_of_k[:, None] == head_of_k[None, :], 0.0,
                   NEG_INF).astype(jnp.float32)                                   # (K, K)

    return {
        "E": E, "ET": E.T, "SEL": SEL, "COL": COL, "COLT": COL.T, "AM": AM,
        "wq_t": (p["wq"] * scale).T, "bq": (p["bq"] * scale).reshape(1, -1),
        "wk_t": p["wk"].T, "bk": p["bk"].reshape(1, -1),
        "wv_t": p["wv"].T, "bv": p["bv"].reshape(1, -1),
        "wo_t": p["wo"].T, "bo": p["bo"].reshape(1, -1),
        "w1_t": p["w1"].T, "b1": p["b1"].reshape(1, -1),
        "w2_t": p["w2"].T, "b2": p["b2"].reshape(1, -1),
        "ln_g": p["ln_g"].reshape(1, -1), "ln_b": p["ln_b"].reshape(1, -1),
    }


# ----------------------------------------------------------------------------
# Pure-JAX reference (mirrors the PyTorch module exactly) and param init
# ----------------------------------------------------------------------------
def encoder_ref(x, p):
    B, L, D = x.shape
    dh = D // NUM_HEAD
    lin = lambda t, w, b: t @ w.T + b
    Q = lin(x, p["wq"], p["bq"]).reshape(B * NUM_HEAD, L, dh)
    K = lin(x, p["wk"], p["bk"]).reshape(B * NUM_HEAD, L, dh)
    V = lin(x, p["wv"], p["bv"]).reshape(B * NUM_HEAD, L, dh)
    s = jnp.einsum("bqd,bkd->bqk", Q, K) * (float(dh) ** (-0.5))
    a = jax.nn.softmax(s, axis=-1)
    ctx = jnp.einsum("bqk,bkd->bqd", a, V).reshape(B, L, D)
    out = lin(ctx, p["wo"], p["bo"]) + x
    h = jax.nn.relu(lin(out, p["w1"], p["b1"]))
    f = lin(h, p["w2"], p["b2"]) + out
    mu = jnp.mean(f, axis=-1, keepdims=True)
    var = jnp.mean((f - mu) ** 2, axis=-1, keepdims=True)
    return (f - mu) / jnp.sqrt(var + LN_EPS) * p["ln_g"] + p["ln_b"]


def init_params(key, dim_model, hidden_dim):
    ks = jax.random.split(key, 12)
    n = lambda k, shape, s=0.05: (s * jax.random.normal(k, shape)).astype(jnp.float32)
    return {
        "wq": n(ks[0], (dim_model, dim_model)), "bq": n(ks[1], (dim_model,)),
        "wk": n(ks[2], (dim_model, dim_model)), "bk": n(ks[3], (dim_model,)),
        "wv": n(ks[4], (dim_model, dim_model)), "bv": n(ks[5], (dim_model,)),
        "wo": n(ks[6], (dim_model, dim_model)), "bo": n(ks[7], (dim_model,)),
        "w1": n(ks[8], (hidden_dim, dim_model)), "b1": n(ks[9], (hidden_dim,)),
        "w2": n(ks[10], (dim_model, hidden_dim)), "b2": n(ks[11], (dim_model,)),
        "ln_g": jnp.ones((dim_model,), jnp.float32),
        "ln_b": jnp.zeros((dim_model,), jnp.float32),
    }


if __name__ == "__main__":
    B, L = 2, 8
    dim_model = 48          # divisible by num_head = 6 -> dim_head = 8
    hidden_dim = 96

    key = jax.random.PRNGKey(0)
    kx, kp = jax.random.split(key)
    x = jax.random.normal(kx, (B, L, dim_model), dtype=jnp.float32)
    params = init_params(kp, dim_model, hidden_dim)

    # one-time prep: transposes, scale folding, .view relayout constants, head mask
    prepped = jax.tree_util.tree_map(jax.block_until_ready,
                                     prepare_params(params, B, L))

    fwd = jax.jit(encoder_forward)
    out = jax.block_until_ready(fwd(x, prepped))
    ref = jax.block_until_ready(encoder_ref(x, params))

    assert out.shape == (B, L, dim_model)
    assert jnp.allclose(out, ref, atol=2e-3, rtol=2e-3), "Pallas result mismatches reference"
    print("KERNEL_OK")
</pallas_src>

<mosaic_0001>
module attributes {stable_mosaic.version = 11 : i64} {
  func.func @_encoder_kernel(%arg0: i32, %arg1: memref<16x48xf32, #tpu.memory_space<vmem>>, %arg2: memref<96x16xf32, #tpu.memory_space<vmem>>, %arg3: memref<16x96xf32, #tpu.memory_space<vmem>>, %arg4: memref<96x48xf32, #tpu.memory_space<vmem>>, %arg5: memref<48x8xf32, #tpu.memory_space<vmem>>, %arg6: memref<8x48xf32, #tpu.memory_space<vmem>>, %arg7: memref<96x96xf32, #tpu.memory_space<vmem>>, %arg8: memref<48x48xf32, #tpu.memory_space<vmem>>, %arg9: memref<1x48xf32, #tpu.memory_space<vmem>>, %arg10: memref<48x48xf32, #tpu.memory_space<vmem>>, %arg11: memref<1x48xf32, #tpu.memory_space<vmem>>, %arg12: memref<48x48xf32, #tpu.memory_space<vmem>>, %arg13: memref<1x48xf32, #tpu.memory_space<vmem>>, %arg14: memref<48x48xf32, #tpu.memory_space<vmem>>, %arg15: memref<1x48xf32, #tpu.memory_space<vmem>>, %arg16: memref<48x96xf32, #tpu.memory_space<vmem>>, %arg17: memref<1x96xf32, #tpu.memory_space<vmem>>, %arg18: memref<96x48xf32, #tpu.memory_space<vmem>>, %arg19: memref<1x48xf32, #tpu.memory_space<vmem>>, %arg20: memref<1x48xf32, #tpu.memory_space<vmem>>, %arg21: memref<1x48xf32, #tpu.memory_space<vmem>>, %arg22: memref<16x48xf32, #tpu.memory_space<vmem>>) attributes {dimension_semantics = [#tpu.dimension_semantics<arbitrary>], iteration_bounds = array<i64: 1>, scalar_prefetch = 0 : i64, scratch_operands = 0 : i64, tpu.core_type = #tpu.core_type<tc>, window_params = [{pipeline_mode = #tpu.pipeline_mode<synchronous>, transform_indices = @transform_0, window_bounds = array<i64: 16, 48>}, {pipeline_mode = #tpu.pipeline_mode<synchronous>, transform_indices = @transform_1, window_bounds = array<i64: 96, 16>}, {pipeline_mode = #tpu.pipeline_mode<synchronous>, transform_indices = @transform_2, window_bounds = array<i64: 16, 96>}, {pipeline_mode = #tpu.pipeline_mode<synchronous>, transform_indices = @transform_3, window_bounds = array<i64: 96, 48>}, {pipeline_mode = #tpu.pipeline_mode<synchronous>, transform_indices = @transform_4, window_bounds = array<i64: 48, 8>}, {pipeline_mode = #tpu.pipeline_mode<synchronous>, transform_indices = @transform_5, window_bounds = array<i64: 8, 48>}, {pipeline_mode = #tpu.pipeline_mode<synchronous>, transform_indices = @transform_6, window_bounds = array<i64: 96, 96>}, {pipeline_mode = #tpu.pipeline_mode<synchronous>, transform_indices = @transform_7, window_bounds = array<i64: 48, 48>}, {pipeline_mode = #tpu.pipeline_mode<synchronous>, transform_indices = @transform_8, window_bounds = array<i64: 1, 48>}, {pipeline_mode = #tpu.pipeline_mode<synchronous>, transform_indices = @transform_9, window_bounds = array<i64: 48, 48>}, {pipeline_mode = #tpu.pipeline_mode<synchronous>, transform_indices = @transform_10, window_bounds = array<i64: 1, 48>}, {pipeline_mode = #tpu.pipeline_mode<synchronous>, transform_indices = @transform_11, window_bounds = array<i64: 48, 48>}, {pipeline_mode = #tpu.pipeline_mode<synchronous>, transform_indices = @transform_12, window_bounds = array<i64: 1, 48>}, {pipeline_mode = #tpu.pipeline_mode<synchronous>, transform_indices = @transform_13, window_bounds = array<i64: 48, 48>}, {pipeline_mode = #tpu.pipeline_mode<synchronous>, transform_indices = @transform_14, window_bounds = array<i64: 1, 48>}, {pipeline_mode = #tpu.pipeline_mode<synchronous>, transform_indices = @transform_15, window_bounds = array<i64: 48, 96>}, {pipeline_mode = #tpu.pipeline_mode<synchronous>, transform_indices = @transform_16, window_bounds = array<i64: 1, 96>}, {pipeline_mode = #tpu.pipeline_mode<synchronous>, transform_indices = @transform_17, window_bounds = array<i64: 96, 48>}, {pipeline_mode = #tpu.pipeline_mode<synchronous>, transform_indices = @transform_18, window_bounds = array<i64: 1, 48>}, {pipeline_mode = #tpu.pipeline_mode<synchronous>, transform_indices = @transform_19, window_bounds = array<i64: 1, 48>}, {pipeline_mode = #tpu.pipeline_mode<synchronous>, transform_indices = @transform_20, window_bounds = array<i64: 1, 48>}, {pipeline_mode = #tpu.pipeline_mode<synchronous>, transform_indices = @transform_21, window_bounds = array<i64: 16, 48>}]} {
    %c0 = arith.constant 0 : index
    %c0_0 = arith.constant 0 : index
    %0 = vector.load %arg1[%c0, %c0_0] : memref<16x48xf32, #tpu.memory_space<vmem>>, vector<16x48xf32>
    %c0_1 = arith.constant 0 : index
    %c0_2 = arith.constant 0 : index
    %1 = vector.load %arg2[%c0_1, %c0_2] : memref<96x16xf32, #tpu.memory_space<vmem>>, vector<96x16xf32>
    %c0_3 = arith.constant 0 : index
    %c0_4 = arith.constant 0 : index
    %2 = vector.load %arg4[%c0_3, %c0_4] : memref<96x48xf32, #tpu.memory_space<vmem>>, vector<96x48xf32>
    %c0_5 = arith.constant 0 : index
    %c0_6 = arith.constant 0 : index
    %3 = vector.load %arg5[%c0_5, %c0_6] : memref<48x8xf32, #tpu.memory_space<vmem>>, vector<48x8xf32>
    %cst = arith.constant dense<0.000000e+00> : vector<96x48xf32>
    %4 = tpu.matmul %1, %0, %cst {dimension_numbers = #tpu.dot_dimension_numbers<[1], [0], [0], [1], [0, 0, 1, 1], [], []>} : vector<96x16xf32>, vector<16x48xf32>, vector<96x48xf32> -> vector<96x48xf32>
    %c0_7 = arith.constant 0 : index
    %c0_8 = arith.constant 0 : index
    %5 = vector.load %arg8[%c0_7, %c0_8] : memref<48x48xf32, #tpu.memory_space<vmem>>, vector<48x48xf32>
    %cst_9 = arith.constant dense<0.000000e+00> : vector<96x48xf32>
    %6 = tpu.matmul %4, %5, %cst_9 {dimension_numbers = #tpu.dot_dimension_numbers<[1], [0], [0], [1], [0, 0, 1, 1], [], []>} : vector<96x48xf32>, vector<48x48xf32>, vector<96x48xf32> -> vector<96x48xf32>
    %c0_10 = arith.constant 0 : index
    %c0_11 = arith.constant 0 : index
    %7 = vector.load %arg9[%c0_10, %c0_11] : memref<1x48xf32, #tpu.memory_space<vmem>>, vector<1x48xf32>
    %8 = vector.broadcast %7 : vector<1x48xf32> to vector<96x48xf32>
    %9 = arith.addf %6, %8 : vector<96x48xf32>
    %10 = arith.mulf %9, %2 : vector<96x48xf32>
    %cst_12 = arith.constant dense<0.000000e+00> : vector<96x8xf32>
    %11 = tpu.matmul %10, %3, %cst_12 {dimension_numbers = #tpu.dot_dimension_numbers<[1], [0], [0], [1], [0, 0, 1, 1], [], []>} : vector<96x48xf32>, vector<48x8xf32>, vector<96x8xf32> -> vector<96x8xf32>
    %c0_13 = arith.constant 0 : index
    %c0_14 = arith.constant 0 : index
    %12 = vector.load %arg10[%c0_13, %c0_14] : memref<48x48xf32, #tpu.memory_space<vmem>>, vector<48x48xf32>
    %cst_15 = arith.constant dense<0.000000e+00> : vector<96x48xf32>
    %13 = tpu.matmul %4, %12, %cst_15 {dimension_numbers = #tpu.dot_dimension_numbers<[1], [0], [0], [1], [0, 0, 1, 1], [], []>} : vector<96x48xf32>, vector<48x48xf32>, vector<96x48xf32> -> vector<96x48xf32>
    %c0_16 = arith.constant 0 : index
    %c0_17 = arith.constant 0 : index
    %14 = vector.load %arg11[%c0_16, %c0_17] : memref<1x48xf32, #tpu.memory_space<vmem>>, vector<1x48xf32>
    %15 = vector.broadcast %14 : vector<1x48xf32> to vector<96x48xf32>
    %16 = arith.addf %13, %15 : vector<96x48xf32>
    %17 = arith.mulf %16, %2 : vector<96x48xf32>
    %cst_18 = arith.constant dense<0.000000e+00> : vector<96x8xf32>
    %18 = tpu.matmul %17, %3, %cst_18 {dimension_numbers = #tpu.dot_dimension_numbers<[1], [0], [0], [1], [0, 0, 1, 1], [], []>} : vector<96x48xf32>, vector<48x8xf32>, vector<96x8xf32> -> vector<96x8xf32>
    %c0_19 = arith.constant 0 : index
    %c0_20 = arith.constant 0 : index
    %19 = vector.load %arg12[%c0_19, %c0_20] : memref<48x48xf32, #tpu.memory_space<vmem>>, vector<48x48xf32>
    %cst_21 = arith.constant dense<0.000000e+00> : vector<96x48xf32>
    %20 = tpu.matmul %4, %19, %cst_21 {dimension_numbers = #tpu.dot_dimension_numbers<[1], [0], [0], [1], [0, 0, 1, 1], [], []>} : vector<96x48xf32>, vector<48x48xf32>, vector<96x48xf32> -> vector<96x48xf32>
    %c0_22 = arith.constant 0 : index
    %c0_23 = arith.constant 0 : index
    %21 = vector.load %arg13[%c0_22, %c0_23] : memref<1x48xf32, #tpu.memory_space<vmem>>, vector<1x48xf32>
    %22 = vector.broadcast %21 : vector<1x48xf32> to vector<96x48xf32>
    %23 = arith.addf %20, %22 : vector<96x48xf32>
    %24 = arith.mulf %23, %2 : vector<96x48xf32>
    %cst_24 = arith.constant dense<0.000000e+00> : vector<96x8xf32>
    %25 = tpu.matmul %24, %3, %cst_24 {dimension_numbers = #tpu.dot_dimension_numbers<[1], [0], [0], [1], [0, 0, 1, 1], [], []>} : vector<96x48xf32>, vector<48x8xf32>, vector<96x8xf32> -> vector<96x8xf32>
    "tpu.trace_start"() <{level = 10 : i32, message = "kd,nd->kn"}> : () -> ()
    %cst_25 = arith.constant dense<0.000000e+00> : vector<96x96xf32>
    %26 = tpu.matmul %11, %18, %cst_25 {dimension_numbers = #tpu.dot_dimension_numbers<[1], [1], [0], [0], [0, 0, 1, 0], [], []>} : vector<96x8xf32>, vector<96x8xf32>, vector<96x96xf32> -> vector<96x96xf32>
    "tpu.trace_stop"() : () -> ()
    %c0_26 = arith.constant 0 : index
    %c0_27 = arith.constant 0 : index
    %27 = vector.load %arg7[%c0_26, %c0_27] : memref<96x96xf32, #tpu.memory_space<vmem>>, vector<96x96xf32>
    %28 = arith.addf %26, %27 : vector<96x96xf32>
    %cst_28 = arith.constant dense<0xFF800000> : vector<96xf32>
    %29 = vector.multi_reduction <maximumf>, %28, %cst_28 [1] : vector<96x96xf32> to vector<96xf32>
    %30 = vector.shape_cast %29 : vector<96xf32> to vector<96x1xf32>
    %31 = vector.broadcast %30 : vector<96x1xf32> to vector<96x96xf32>
    %32 = arith.subf %28, %31 : vector<96x96xf32>
    %33 = math.exp %32 : vector<96x96xf32>
    %cst_29 = arith.constant dense<0.000000e+00> : vector<96xf32>
    %34 = vector.multi_reduction <add>, %33, %cst_29 [1] : vector<96x96xf32> to vector<96xf32>
    %35 = vector.shape_cast %34 : vector<96xf32> to vector<96x1xf32>
    %36 = vector.broadcast %35 : vector<96x1xf32> to vector<96x96xf32>
    %37 = arith.divf %33, %36 : vector<96x96xf32>
    %cst_30 = arith.constant dense<0.000000e+00> : vector<96x8xf32>
    %38 = tpu.matmul %37, %25, %cst_30 {dimension_numbers = #tpu.dot_dimension_numbers<[1], [0], [0], [1], [0, 0, 1, 1], [], []>} : vector<96x96xf32>, vector<96x8xf32>, vector<96x8xf32> -> vector<96x8xf32>
    %c0_31 = arith.constant 0 : index
    %c0_32 = arith.constant 0 : index
    %39 = vector.load %arg6[%c0_31, %c0_32] : memref<8x48xf32, #tpu.memory_space<vmem>>, vector<8x48xf32>
    %cst_33 = arith.constant dense<0.000000e+00> : vector<96x48xf32>
    %40 = tpu.matmul %38, %39, %cst_33 {dimension_numbers = #tpu.dot_dimension_numbers<[1], [0], [0], [1], [0, 0, 1, 1], [], []>} : vector<96x8xf32>, vector<8x48xf32>, vector<96x48xf32> -> vector<96x48xf32>
    %c0_34 = arith.constant 0 : index
    %c0_35 = arith.constant 0 : index
    %41 = vector.load %arg3[%c0_34, %c0_35] : memref<16x96xf32, #tpu.memory_space<vmem>>, vector<16x96xf32>
    %42 = arith.mulf %40, %2 : vector<96x48xf32>
    %cst_36 = arith.constant dense<0.000000e+00> : vector<16x48xf32>
    %43 = tpu.matmul %41, %42, %cst_36 {dimension_numbers = #tpu.dot_dimension_numbers<[1], [0], [0], [1], [0, 0, 1, 1], [], []>} : vector<16x96xf32>, vector<96x48xf32>, vector<16x48xf32> -> vector<16x48xf32>
    %c0_37 = arith.constant 0 : index
    %c0_38 = arith.constant 0 : index
    %44 = vector.load %arg14[%c0_37, %c0_38] : memref<48x48xf32, #tpu.memory_space<vmem>>, vector<48x48xf32>
    %cst_39 = arith.constant dense<0.000000e+00> : vector<16x48xf32>
    %45 = tpu.matmul %43, %44, %cst_39 {dimension_numbers = #tpu.dot_dimension_numbers<[1], [0], [0], [1], [0, 0, 1, 1], [], []>} : vector<16x48xf32>, vector<48x48xf32>, vector<16x48xf32> -> vector<16x48xf32>
    %c0_40 = arith.constant 0 : index
    %c0_41 = arith.constant 0 : index
    %46 = vector.load %arg15[%c0_40, %c0_41] : memref<1x48xf32, #tpu.memory_space<vmem>>, vector<1x48xf32>
    %47 = vector.broadcast %46 : vector<1x48xf32> to vector<16x48xf32>
    %48 = arith.addf %45, %47 : vector<16x48xf32>
    %49 = arith.addf %48, %0 : vector<16x48xf32>
    %c0_42 = arith.constant 0 : index
    %c0_43 = arith.constant 0 : index
    %50 = vector.load %arg16[%c0_42, %c0_43] : memref<48x96xf32, #tpu.memory_space<vmem>>, vector<48x96xf32>
    %cst_44 = arith.constant dense<0.000000e+00> : vector<16x96xf32>
    %51 = tpu.matmul %49, %50, %cst_44 {dimension_numbers = #tpu.dot_dimension_numbers<[1], [0], [0], [1], [0, 0, 1, 1], [], []>} : vector<16x48xf32>, vector<48x96xf32>, vector<16x96xf32> -> vector<16x96xf32>
    %c0_45 = arith.constant 0 : index
    %c0_46 = arith.constant 0 : index
    %52 = vector.load %arg17[%c0_45, %c0_46] : memref<1x96xf32, #tpu.memory_space<vmem>>, vector<1x96xf32>
    %53 = vector.broadcast %52 : vector<1x96xf32> to vector<16x96xf32>
    %54 = arith.addf %51, %53 : vector<16x96xf32>
    %cst_47 = arith.constant 0.000000e+00 : f32
    %55 = vector.broadcast %cst_47 : f32 to vector<16x96xf32>
    %56 = arith.maximumf %54, %55 : vector<16x96xf32>
    %c0_48 = arith.constant 0 : index
    %c0_49 = arith.constant 0 : index
    %57 = vector.load %arg18[%c0_48, %c0_49] : memref<96x48xf32, #tpu.memory_space<vmem>>, vector<96x48xf32>
    %cst_50 = arith.constant dense<0.000000e+00> : vector<16x48xf32>
    %58 = tpu.matmul %56, %57, %cst_50 {dimension_numbers = #tpu.dot_dimension_numbers<[1], [0], [0], [1], [0, 0, 1, 1], [], []>} : vector<16x96xf32>, vector<96x48xf32>, vector<16x48xf32> -> vector<16x48xf32>
    %c0_51 = arith.constant 0 : index
    %c0_52 = arith.constant 0 : index
    %59 = vector.load %arg19[%c0_51, %c0_52] : memref<1x48xf32, #tpu.memory_space<vmem>>, vector<1x48xf32>
    %60 = vector.broadcast %59 : vector<1x48xf32> to vector<16x48xf32>
    %61 = arith.addf %58, %60 : vector<16x48xf32>
    %62 = arith.addf %61, %49 : vector<16x48xf32>
    %cst_53 = arith.constant dense<0.000000e+00> : vector<16xf32>
    %63 = vector.multi_reduction <add>, %62, %cst_53 [1] : vector<16x48xf32> to vector<16xf32>
    %64 = vector.shape_cast %63 : vector<16xf32> to vector<16x1xf32>
    %cst_54 = arith.constant 4.800000e+01 : f32
    %65 = vector.broadcast %cst_54 : f32 to vector<16x1xf32>
    %66 = arith.divf %64, %65 : vector<16x1xf32>
    %67 = vector.broadcast %66 : vector<16x1xf32> to vector<16x48xf32>
    %68 = arith.subf %62, %67 : vector<16x48xf32>
    %69 = arith.mulf %68, %68 : vector<16x48xf32>
    %cst_55 = arith.constant dense<0.000000e+00> : vector<16xf32>
    %70 = vector.multi_reduction <add>, %69, %cst_55 [1] : vector<16x48xf32> to vector<16xf32>
    %71 = vector.shape_cast %70 : vector<16xf32> to vector<16x1xf32>
    %cst_56 = arith.constant 4.800000e+01 : f32
    %72 = vector.broadcast %cst_56 : f32 to vector<16x1xf32>
    %73 = arith.divf %71, %72 : vector<16x1xf32>
    %74 = vector.broadcast %66 : vector<16x1xf32> to vector<16x48xf32>
    %75 = arith.subf %62, %74 : vector<16x48xf32>
    %cst_57 = arith.constant 9.99999974E-6 : f32
    %76 = vector.broadcast %cst_57 : f32 to vector<16x1xf32>
    %77 = arith.addf %73, %76 : vector<16x1xf32>
    %78 = math.rsqrt %77 : vector<16x1xf32>
    %79 = vector.broadcast %78 : vector<16x1xf32> to vector<16x48xf32>
    %80 = arith.mulf %75, %79 : vector<16x48xf32>
    %c0_58 = arith.constant 0 : index
    %c0_59 = arith.constant 0 : index
    %81 = vector.load %arg20[%c0_58, %c0_59] : memref<1x48xf32, #tpu.memory_space<vmem>>, vector<1x48xf32>
    %82 = vector.broadcast %81 : vector<1x48xf32> to vector<16x48xf32>
    %83 = arith.mulf %80, %82 : vector<16x48xf32>
    %c0_60 = arith.constant 0 : index
    %c0_61 = arith.constant 0 : index
    %84 = vector.load %arg21[%c0_60, %c0_61] : memref<1x48xf32, #tpu.memory_space<vmem>>, vector<1x48xf32>
    %85 = vector.broadcast %84 : vector<1x48xf32> to vector<16x48xf32>
    %86 = arith.addf %83, %85 : vector<16x48xf32>
    %c0_62 = arith.constant 0 : index
    %c0_63 = arith.constant 0 : index
    %87 = vector.load %arg22[%c0_62, %c0_63] : memref<16x48xf32, #tpu.memory_space<vmem>>, vector<16x48xf32>
    tpu.vector_store %arg22[%c0_62, %c0_63], %86 {strides = array<i32>} : memref<16x48xf32, #tpu.memory_space<vmem>>, vector<16x48xf32>,
    return
  }
  func.func @transform_0(%arg0: i32) -> (i32, i32) {
    %c0_i32 = arith.constant 0 : i32
    %c0_i32_0 = arith.constant 0 : i32
    %c0_i32_1 = arith.constant 0 : i32
    return %c0_i32, %c0_i32_0 : i32, i32
  }
  func.func @transform_1(%arg0: i32) -> (i32, i32) {
    %c0_i32 = arith.constant 0 : i32
    %c0_i32_0 = arith.constant 0 : i32
    %c0_i32_1 = arith.constant 0 : i32
    return %c0_i32, %c0_i32_0 : i32, i32
  }
  func.func @transform_2(%arg0: i32) -> (i32, i32) {
    %c0_i32 = arith.constant 0 : i32
    %c0_i32_0 = arith.constant 0 : i32
    %c0_i32_1 = arith.constant 0 : i32
    return %c0_i32, %c0_i32_0 : i32, i32
  }
  func.func @transform_3(%arg0: i32) -> (i32, i32) {
    %c0_i32 = arith.constant 0 : i32
    %c0_i32_0 = arith.constant 0 : i32
    %c0_i32_1 = arith.constant 0 : i32
    return %c0_i32, %c0_i32_0 : i32, i32
  }
  func.func @transform_4(%arg0: i32) -> (i32, i32) {
    %c0_i32 = arith.constant 0 : i32
    %c0_i32_0 = arith.constant 0 : i32
    %c0_i32_1 = arith.constant 0 : i32
    return %c0_i32, %c0_i32_0 : i32, i32
  }
  func.func @transform_5(%arg0: i32) -> (i32, i32) {
    %c0_i32 = arith.constant 0 : i32
    %c0_i32_0 = arith.constant 0 : i32
    %c0_i32_1 = arith.constant 0 : i32
    return %c0_i32, %c0_i32_0 : i32, i32
  }
  func.func @transform_6(%arg0: i32) -> (i32, i32) {
    %c0_i32 = arith.constant 0 : i32
    %c0_i32_0 = arith.constant 0 : i32
    %c0_i32_1 = arith.constant 0 : i32
    return %c0_i32, %c0_i32_0 : i32, i32
  }
  func.func @transform_7(%arg0: i32) -> (i32, i32) {
    %c0_i32 = arith.constant 0 : i32
    %c0_i32_0 = arith.constant 0 : i32
    %c0_i32_1 = arith.constant 0 : i32
    return %c0_i32, %c0_i32_0 : i32, i32
  }
  func.func @transform_8(%arg0: i32) -> (i32, i32) {
    %c0_i32 = arith.constant 0 : i32
    %c0_i32_0 = arith.constant 0 : i32
    %c0_i32_1 = arith.constant 0 : i32
    return %c0_i32, %c0_i32_0 : i32, i32
  }
  func.func @transform_9(%arg0: i32) -> (i32, i32) {
    %c0_i32 = arith.constant 0 : i32
    %c0_i32_0 = arith.constant 0 : i32
    %c0_i32_1 = arith.constant 0 : i32
    return %c0_i32, %c0_i32_0 : i32, i32
  }
  func.func @transform_10(%arg0: i32) -> (i32, i32) {
    %c0_i32 = arith.constant 0 : i32
    %c0_i32_0 = arith.constant 0 : i32
    %c0_i32_1 = arith.constant 0 : i32
    return %c0_i32, %c0_i32_0 : i32, i32
  }
  func.func @transform_11(%arg0: i32) -> (i32, i32) {
    %c0_i32 = arith.constant 0 : i32
    %c0_i32_0 = arith.constant 0 : i32
    %c0_i32_1 = arith.constant 0 : i32
    return %c0_i32, %c0_i32_0 : i32, i32
  }
  func.func @transform_12(%arg0: i32) -> (i32, i32) {
    %c0_i32 = arith.constant 0 : i32
    %c0_i32_0 = arith.constant 0 : i32
    %c0_i32_1 = arith.constant 0 : i32
    return %c0_i32, %c0_i32_0 : i32, i32
  }
  func.func @transform_13(%arg0: i32) -> (i32, i32) {
    %c0_i32 = arith.constant 0 : i32
    %c0_i32_0 = arith.constant 0 : i32
    %c0_i32_1 = arith.constant 0 : i32
    return %c0_i32, %c0_i32_0 : i32, i32
  }
  func.func @transform_14(%arg0: i32) -> (i32, i32) {
    %c0_i32 = arith.constant 0 : i32
    %c0_i32_0 = arith.constant 0 : i32
    %c0_i32_1 = arith.constant 0 : i32
    return %c0_i32, %c0_i32_0 : i32, i32
  }
  func.func @transform_15(%arg0: i32) -> (i32, i32) {
    %c0_i32 = arith.constant 0 : i32
    %c0_i32_0 = arith.constant 0 : i32
    %c0_i32_1 = arith.constant 0 : i32
    return %c0_i32, %c0_i32_0 : i32, i32
  }
  func.func @transform_16(%arg0: i32) -> (i32, i32) {
    %c0_i32 = arith.constant 0 : i32
    %c0_i32_0 = arith.constant 0 : i32
    %c0_i32_1 = arith.constant 0 : i32
    return %c0_i32, %c0_i32_0 : i32, i32
  }
  func.func @transform_17(%arg0: i32) -> (i32, i32) {
    %c0_i32 = arith.constant 0 : i32
    %c0_i32_0 = arith.constant 0 : i32
    %c0_i32_1 = arith.constant 0 : i32
    return %c0_i32, %c0_i32_0 : i32, i32
  }
  func.func @transform_18(%arg0: i32) -> (i32, i32) {
    %c0_i32 = arith.constant 0 : i32
    %c0_i32_0 = arith.constant 0 : i32
    %c0_i32_1 = arith.constant 0 : i32
    return %c0_i32, %c0_i32_0 : i32, i32
  }
  func.func @transform_19(%arg0: i32) -> (i32, i32) {
    %c0_i32 = arith.constant 0 : i32
    %c0_i32_0 = arith.constant 0 : i32
    %c0_i32_1 = arith.constant 0 : i32
    return %c0_i32, %c0_i32_0 : i32, i32
  }
  func.func @transform_20(%arg0: i32) -> (i32, i32) {
    %c0_i32 = arith.constant 0 : i32
    %c0_i32_0 = arith.constant 0 : i32
    %c0_i32_1 = arith.constant 0 : i32
    return %c0_i32, %c0_i32_0 : i32, i32
  }
  func.func @transform_21(%arg0: i32) -> (i32, i32) {
    %c0_i32 = arith.constant 0 : i32
    %c0_i32_0 = arith.constant 0 : i32
    %c0_i32_1 = arith.constant 0 : i32
    return %c0_i32, %c0_i32_0 : i32, i32
  }
}

</mosaic_0001>

<bundles_post_ra>
// kernel: encoder_forward.1
= control target key start
LH: loop header
LB: loop body
LE: loop exit
PB: predicated region body
PF: predicated region fallthrough
CT: control target
= control target key end

     0   :  { %s4320_s0 = inlined_call_operand.hbm [shape: f32[16,48], index: 0, kind: input, shape index: {}]   ;;  %s4321_s1 = inlined_call_operand.vmem [shape: f32[96,16], index: 1, kind: input, shape index: {}]   ;;  %s4322_s2 = inlined_call_operand.vmem [shape: f32[16,96], index: 2, kind: input, shape index: {}]   ;;  %s4323_s3 = inlined_call_operand.vmem [shape: f32[96,48], index: 3, kind: input, shape index: {}]   ;;  %s4324_s4 = inlined_call_operand.vmem [shape: f32[48,8], index: 4, kind: input, shape index: {}]   ;;  %s4325_s5 = inlined_call_operand.hbm [shape: f32[8,48], index: 5, kind: input, shape index: {}]   ;;  %s4326_s6 = inlined_call_operand.vmem [shape: f32[96,96], index: 6, kind: input, shape index: {}]   ;;  %s4327_s7 = inlined_call_operand.vmem [shape: f32[48,48], index: 7, kind: input, shape index: {}]   ;;  %s4328_s8 = inlined_call_operand.vmem [shape: f32[1,48], index: 8, kind: input, shape index: {}]   ;;  %s4329_s9 = inlined_call_operand.vmem [shape: f32[48,48], index: 9, kind: input, shape index: {}]   ;;  %s4330_s10 = inlined_call_operand.vmem [shape: f32[1,48], index: 10, kind: input, shape index: {}]   ;;  %s4331_s11 = inlined_call_operand.vmem [shape: f32[48,48], index: 11, kind: input, shape index: {}]   ;;  %s4332_s12 = inlined_call_operand.vmem [shape: f32[1,48], index: 12, kind: input, shape index: {}]   ;;  %s4333_s13 = inlined_call_operand.vmem [shape: f32[48,48], index: 13, kind: input, shape index: {}]   ;;  %s4334_s14 = inlined_call_operand.vmem [shape: f32[1,48], index: 14, kind: input, shape index: {}]   ;;  %s4335_s15 = inlined_call_operand.vmem [shape: f32[48,96], index: 15, kind: input, shape index: {}]   ;;  %s4336_s16 = inlined_call_operand.vmem [shape: f32[1,96], index: 16, kind: input, shape index: {}]   ;;  %s4337_s17 = inlined_call_operand.vmem [shape: f32[96,48], index: 17, kind: input, shape index: {}]   ;;  %s4338_s18 = inlined_call_operand.vmem [shape: f32[1,48], index: 18, kind: input, shape index: {}]   ;;  %s4339_s19 = inlined_call_operand.vmem [shape: f32[1,48], index: 19, kind: input, shape index: {}]   ;;  %s4340_s20 = inlined_call_operand.vmem [shape: f32[1,48], index: 20, kind: input, shape index: {}]   ;;  %s4341_s21 = inlined_call_operand.hbm [shape: f32[16,48], index: 21, kind: output, shape index: {}]  }
   0x1   :  { %4349 = sst [smem:[#allocation11_spill]] %s4320_s0 }
   0x2   :  { %4350 = sst [smem:[#allocation12_spill]] %s4321_s1 }
   0x3   :  { %4351 = sst [smem:[#allocation13_spill]] %s4322_s2 }
   0x4   :  { %4352 = sst [smem:[#allocation14_spill]] %s4323_s3 }
   0x5   :  { %4353 = sst [smem:[#allocation15_spill]] %s4324_s4 }
   0x6   :  { %4354 = sst [smem:[#allocation16_spill]] %s4325_s5 }
   0x7   :  { %4355 = sst [smem:[#allocation17_spill]] %s4340_s20 }
   0x8   :  { %4356 = sst [smem:[#allocation18_spill]] %s4341_s21 }
   0x9   :  { %26 = vsyncpa [#allocation3], 0 }
   0xa   :  { %27 = vsyncpa [#allocation6], 0 }
   0xb   :  { %28 = vsyncpa [#allocation4], 0  ;;  %s3489_s2 = smov [#allocation2]   ;;  %s4357_s3 = sld [smem:[#allocation11_spill]] }
   0xc   :  { %s34_s25 = sshll.u32 %s3489_s2, 4  ;;  %s35_s25 = int_to_ptr.vmem [resolvable:$true] %s34_s25 }
  0x11   :  { %s3417_s28 = scalar_lea.hbm %s4357_s3, 256 }
  0x12   :  { %p3418_p0 = scmp.ne.s32.totalorder %s4357_s3, %s3417_s28  ;;  %p3421_p1 = scmp.lt.u32.totalorder %s3417_s28, %s4357_s3 }
  0x14   :  { %p3423_p2 = pnand %p3421_p1, %p3418_p0 }
  0x16   :  { %3426 = shalt.err (!%p3423_p2)
}
  0x17   :  { %s3427_s5 = scalar_lea.vmem %s35_s25, 256  ;;  %p3432_p4 = scmp.lt.s32.totalorder %s35_s25, %s35_s25 }
  0x18   :  { %p3428_p3 = scmp.ne.s32.totalorder %s35_s25, %s3427_s5  ;;  %p3433_p5 = scmp.lt.s32.totalorder %s3427_s5, %s3427_s5 }
  0x1a   :  { %p3434_p6 = por %p3433_p5, %p3432_p4 }
  0x1c   :  { %p3435_p7 = pnand %p3434_p6, %p3428_p3 }
  0x1e   :  { %3438 = shalt.err (!%p3435_p7)
}
  0x1f   :  { %s3490_s22 = smov 128   ;;  %s3491_s23 = smov 8  }
  0x20   :  { %40 = dma.hbm_to_vmem [thread:$0]  %s4357_s3, 256, %s35_s25, [#allocation3], %s3490_s22, %s3490_s22, %s3491_s23  }
  0x21   :  { %s3492_s2 = smov [#allocation5]   ;;  %s4358_s29 = sld [smem:[#allocation16_spill]] }
  0x22   :  { %s55_s26 = sshll.u32 %s3492_s2, 4  ;;  %s56_s26 = int_to_ptr.vmem [resolvable:$true] %s55_s26 }
  0x27   :  { %s3439_s0 = scalar_lea.hbm %s4358_s29, 128 }
  0x28   :  { %p3440_p8 = scmp.ne.s32.totalorder %s4358_s29, %s3439_s0  ;;  %p3443_p9 = scmp.lt.u32.totalorder %s3439_s0, %s4358_s29 }
  0x2a   :  { %p3445_p10 = pnand %p3443_p9, %p3440_p8 }
  0x2c   :  { %3448 = shalt.err (!%p3445_p10)
}
  0x2d   :  { %s3449_s20 = scalar_lea.vmem %s56_s26, 128  ;;  %p3454_p12 = scmp.lt.s32.totalorder %s56_s26, %s56_s26 }
  0x2e   :  { %p3450_p11 = scmp.ne.s32.totalorder %s56_s26, %s3449_s20  ;;  %p3455_p13 = scmp.lt.s32.totalorder %s3449_s20, %s3449_s20 }
  0x30   :  { %p3456_p0 = por %p3455_p13, %p3454_p12 }
  0x32   :  { %p3457_p1 = pnand %p3456_p0, %p3450_p11 }
  0x34   :  { %3460 = shalt.err (!%p3457_p1)
}
  0x35   :  { %58 = dma.hbm_to_vmem [thread:$0]  %s4358_s29, 128, %s56_s26, [#allocation6]  }
  0x36   :  { %3483 = dma.done.wait [#allocation3], 256  }
  0x37   :  { %3484 = vsyncadd [#allocation3], 4294967040 }
  0x38   :  { %3485 = dma.done.wait [#allocation6], 128  }
  0x39   :  { %3486 = vsyncadd [#allocation6], 4294967168  ;;  %vm127_vm0 = vcmask 130048   ;;  %v95_v0 = vld [vmem:[#allocation2] sm:$0xff]  ;;  %v96_v1 = vld [vmem:[#allocation2 + $0x8] sm:$0xff]  ;;  %s4359_s24 = sld [smem:[#allocation12_spill]] }
  0x3a   :  { %v3144_v3 = vpack.c.bf16 %v96_v1, %v95_v0  ;;  %v289_v6 = vld [vmem:[%s4327_s7] sm:$0xff]  ;;  %v290_v7 = vld [vmem:[%s4327_s7 + $0x8] sm:$0xff]  ;;  %v291_v8 = vld [vmem:[%s4327_s7 + $0x10] sm:$0xff]  ;;  %s4360_s25 = sld [smem:[#allocation15_spill]]  ;;  %vm302_vm1 = vcmask 392192   ;;  %vm1271_vm2 = vcmask 64512  }
  0x3b   :  { %v292_v9 = vld [vmem:[%s4327_s7 + $0x18] sm:$0xff]  ;;  %v3148_v10 = vpack.c.bf16 %v290_v7, %v289_v6  ;;  %v293_v12 = vld [vmem:[%s4327_s7 + $0x20] sm:$0xff]  ;;  %v294_v13 = vld [vmem:[%s4327_s7 + $0x28] sm:$0xff]  ;;  %vm1469_vm4 = vcmask 785408   ;;  %s4364_s29 = sld [smem:[#allocation13_spill]] }
  0x3c   :  { %3145 = vmatprep.subr.bf16.mxu0 %v3144_v3  ;;  %v3152_v11 = vpack.c.bf16 %v292_v9, %v291_v8  ;;  %v3156_v16 = vpack.c.bf16 %v294_v13, %v293_v12  ;;  %v637_v24 = vld [vmem:[%s4329_s9] sm:$0xff]  ;;  %v638_v25 = vld [vmem:[%s4329_s9 + $0x8] sm:$0xff]  ;;  %v639_v39 = vld [vmem:[%s4329_s9 + $0x10] sm:$0xff] }
  0x3d   :  { %3147 = vmatpush3.bf16.msra.mxu0 %v3144_v3  ;;  %3352 = vmatprep.subr.bf16.mxu1 %v3148_v10  ;;  %v3172_v26 = vpack.c.bf16 %v638_v25, %v637_v24  ;;  %v640_v40 = vld [vmem:[%s4329_s9 + $0x18] sm:$0xff]  ;;  %v641_v44 = vld [vmem:[%s4329_s9 + $0x20] sm:$0xff]  ;;  %v642_v45 = vld [vmem:[%s4329_s9 + $0x28] sm:$0xff]  ;;  %s3493_s9 = smov [#allocation7]  }
  0x3e   :  { %3149 = vmatprep.subr.bf16.mxu0 %v3148_v10  ;;  %3355 = vmatpush3.bf16.msra.mxu1 %v3148_v10  ;;  %v3176_v43 = vpack.c.bf16 %v640_v40, %v639_v39  ;;  %v3180_v48 = vpack.c.bf16 %v642_v45, %v641_v44  ;;  %v948_v49 = vld [vmem:[%s4331_s11] sm:$0xff]  ;;  %v949_v50 = vld [vmem:[%s4331_s11 + $0x8] sm:$0xff]  ;;  %v950_v54 = vld [vmem:[%s4331_s11 + $0x10] sm:$0xff] }
  0x3f   :  { %v97_v2 = vld [vmem:[%s4359_s24] sm:$0xff]  ;;  %v98_v4 = vld [vmem:[%s4359_s24 + $0x8] sm:$0xff]  ;;  %v99_v5 = vld [vmem:[%s4359_s24 + $0x10] sm:$0xff]  ;;  %3353 = vmatprep.subr.bf16.mxu1 %v3152_v11  ;;  %v3196_v53 = vpack.c.bf16 %v949_v50, %v948_v49 }
  0x40   :  { %2758 = vmatprep.mubr.msk.f32.mxu0 %vm127_vm0, %v97_v2  ;;  %v100_v14 = vld [vmem:[%s4359_s24 + $0x18] sm:$0xff]  ;;  %v101_v15 = vld [vmem:[%s4359_s24 + $0x20] sm:$0xff]  ;;  %v102_v17 = vld [vmem:[%s4359_s24 + $0x28] sm:$0xff] }
  0x41   :  { %2759 = vmatmul.mubr.msk.f32.vlgmr.msra.gmra.mrb[0].mxu0 %vm127_vm0, %v98_v4  ;;  %v103_v18 = vld [vmem:[%s4359_s24 + $0x30] sm:$0xff]  ;;  %v104_v19 = vld [vmem:[%s4359_s24 + $0x38] sm:$0xff]  ;;  %v105_v20 = vld [vmem:[%s4359_s24 + $0x40] sm:$0xff] }
  0x42   :  { %2761 = vmatprep.mubr.msk.f32.mxu0 %vm127_vm0, %v99_v5  ;;  %3151 = vmatpush3.bf16.msra.mxu0 %v3148_v10  ;;  %v106_v21 = vld [vmem:[%s4359_s24 + $0x48] sm:$0xff]  ;;  %v107_v22 = vld [vmem:[%s4359_s24 + $0x50] sm:$0xff]  ;;  %v108_v23 = vld [vmem:[%s4359_s24 + $0x58] sm:$0xff]  ;;  %s4361_s24 = sld [smem:[#allocation14_spill]] }
  0x43   :  { %3153 = vmatprep.subr.bf16.mxu0 %v3152_v11  ;;  %3356 = vmatpush3.bf16.msra.mxu1 %v3152_v11  ;;  %v121_v27 = vld [vmem:[%s4360_s25] sm:$0xff]  ;;  %v122_v28 = vld [vmem:[%s4360_s25 + $0x8] sm:$0xff]  ;;  %v123_v30 = vld [vmem:[%s4360_s25 + $0x10] sm:$0xff] }
  0x44   :  { %3354 = vmatprep.subr.bf16.mxu1 %v3156_v16  ;;  %v3709_v29 = vpack.c.bf16 %v122_v28, %v121_v27  ;;  %v124_v31 = vld [vmem:[%s4360_s25 + $0x18] sm:$0xff]  ;;  %v952_v57 = vld [vmem:[%s4331_s11 + $0x20] sm:$0xff]  ;;  %v953_v58 = vld [vmem:[%s4331_s11 + $0x28] sm:$0xff] }
  0x45   :  { %2762 = vmatmul.mubr.msk.f32.gmra.mrb[2].mxu0 %vm127_vm0, %v100_v14  ;;  %v3722_v34 = vpack.c.bf16 %v124_v31, %v123_v30  ;;  %v951_v55 = vld [vmem:[%s4331_s11 + $0x18] sm:$0xff]  ;;  %v3204_v59 = vpack.c.bf16 %v953_v58, %v952_v57  ;;  %v125_v60 = vld [vmem:[%s4360_s25 + $0x20] sm:$0xff]  ;;  %v126_v61 = vld [vmem:[%s4360_s25 + $0x28] sm:$0xff]  ;;  %s4365_s25 = sld [smem:[#allocation17_spill]] }
  0x46   :  { %2764 = vmatprep.mubr.msk.f32.mxu0 %vm127_vm0, %v101_v15  ;;  %3155 = vmatpush3.bf16.msra.mxu0 %v3152_v11  ;;  %v3200_v56 = vpack.c.bf16 %v951_v55, %v950_v54  ;;  %v3810_v62 = vpack.c.bf16 %v126_v61, %v125_v60  ;;  %v2391_v63 = vld [vmem:[%s4328_s8] ss:$0 sm:$0xff]  ;;  %vm3992_vm3 = vmpackc.low %vm1271_vm2, %vm1271_vm2  ;;  %s2366_s8 = sshll.u32 %s3493_s9, 4  ;;  %s2367_s8 = int_to_ptr.vmem [resolvable:$true] %s2366_s8 }
  0x47   :  { %3157 = vmatprep.subr.bf16.mxu0 %v3156_v16  ;;  %3357 = vmatpush3.bf16.msra.mxu1 %v3156_v16  ;;  %s3461_s1 = scalar_lea.vmem %s2367_s8, 256  ;;  %p3466_p3 = scmp.lt.s32.totalorder %s2367_s8, %s2367_s8 }
  0x48   :  { %3173 = vmatprep.subr.bf16.mxu1 %v3172_v26  ;;  %v3821_v2 = vld [vmem:[%s4361_s24] sm:$0xff]  ;;  %v3826_v4 = vld [vmem:[%s4361_s24 + $0x8] sm:$0xff]  ;;  %v3833_v10 = vld [vmem:[%s4361_s24 + $0x10] sm:$0xff]  ;;  %p3462_p2 = scmp.ne.s32.totalorder %s2367_s8, %s3461_s1  ;;  %p3467_p4 = scmp.lt.s32.totalorder %s3461_s1, %s3461_s1 }
  0x49   :  { %2765 = vmatmul.mubr.msk.f32.gmra.mrb[4].mxu0 %vm127_vm0, %v102_v17  ;;  %v3838_v12 = vld [vmem:[%s4361_s24 + $0x18] sm:$0xff]  ;;  %v3895_v44 = vld [vmem:[%s4361_s24 + $0x50] sm:$0xff] }
  0x4a   :  { %2767 = vmatprep.mubr.msk.f32.mxu0 %vm127_vm0, %v103_v18  ;;  %3159 = vmatpush3.bf16.msra.mxu0 %v3156_v16  ;;  %v3848_v18 = vld [vmem:[%s4361_s24 + $0x20] sm:$0xff]  ;;  %v3870_v28 = vld [vmem:[%s4361_s24 + $0x38] sm:$0xff]  ;;  %p3468_p5 = por %p3467_p4, %p3466_p3 }
  0x4b   :  { %3161 = vmatprep.subr.bf16.mxu0 %v3709_v29 }
  0x4c   :  { %p3469_p6 = pnand %p3468_p5, %p3462_p2 }
  0x4d   :  { %2768 = vmatmul.mubr.msk.f32.gmra.mrb[6].mxu0 %vm127_vm0, %v104_v19 }
  0x4e   :  { %2770 = vmatprep.mubr.msk.f32.mxu0 %vm127_vm0, %v105_v20  ;;  %v3854_v20 = vld [vmem:[%s4361_s24 + $0x28] sm:$0xff] }
  0x51   :  { %2771 = vmatmul.mubr.msk.f32.gmra.mrb[8].mxu0 %vm127_vm0, %v106_v21 }
  0x52   :  { %2773 = vmatprep.mubr.msk.f32.mxu0 %vm127_vm0, %v107_v22 }
  0x55   :  { %2774 = vmatmul.mubr.msk.f32.gmra.mrb[10].mxu0 %vm127_vm0, %v108_v23 }
 0x114   :  { %v3718_v32 = vpop.f32.mrb[0].mxu0 }
 0x115   :  { %v3720_v33 = vpop.f32.mrb[1].mxu0 }
 0x116   :  { %2788 = vmatprep.mubr.msk.f32.mxu0 %vm302_vm1, %v3720_v33 }
 0x117   :  { %2789 = vmatmul.mubr.msk.f32.vlgmr.msra.gmra.mrb[12].mxu0 %vm302_vm1, %v3718_v32 }
 0x118   :  { %v3728_v35 = vpop.f32.mrb[2].mxu0  ;;  %3163 = vmatpush3.bf16.msra.mxu0 %v3709_v29 }
 0x119   :  { %v240_v36 = vpop.f32.mrb[3].mxu0  ;;  %3165 = vmatprep.subr.bf16.mxu0 %v3722_v34 }
 0x11a   :  { %2791 = vmatprep.mubr.msk.f32.mxu0 %vm302_vm1, %v240_v36 }
 0x11b   :  { %2792 = vmatmul.mubr.msk.f32.gmra.mrb[14].mxu0 %vm302_vm1, %v3728_v35 }
 0x11c   :  { %v2766_v37 = vpop.f32.mrb[4].mxu0  ;;  %3167 = vmatpush3.bf16.msra.mxu0 %v3722_v34 }
 0x11d   :  { %v250_v38 = vpop.f32.mrb[5].mxu0  ;;  %3169 = vmatprep.subr.bf16.mxu0 %v3810_v62 }
 0x11e   :  { %2794 = vmatprep.mubr.msk.f32.mxu0 %vm302_vm1, %v250_v38 }
 0x11f   :  { %2795 = vmatmul.mubr.msk.f32.gmra.mrb[16].mxu0 %vm302_vm1, %v2766_v37 }
 0x120   :  { %v2769_v41 = vpop.f32.mrb[6].mxu0  ;;  %3171 = vmatpush3.bf16.msra.mxu0 %v3810_v62 }
 0x121   :  { %v260_v42 = vpop.f32.mrb[7].mxu0  ;;  %3185 = vmatprep.subr.bf16.mxu0 %v3709_v29 }
 0x122   :  { %2797 = vmatprep.mubr.msk.f32.mxu1 %vm302_vm1, %v260_v42 }
 0x123   :  { %2798 = vmatmul.mubr.msk.f32.vlgmr.msra.gmra.mrb[0].mxu1 %vm302_vm1, %v2769_v41 }
 0x124   :  { %v2772_v46 = vpop.f32.mrb[8].mxu0  ;;  %3175 = vmatpush3.bf16.msra.mxu1 %v3172_v26  ;;  %v3864_v26 = vld [vmem:[%s4361_s24 + $0x30] sm:$0xff] }
 0x125   :  { %v270_v47 = vpop.f32.mrb[9].mxu0  ;;  %3177 = vmatprep.subr.bf16.mxu1 %v3176_v43 }
 0x126   :  { %2800 = vmatprep.mubr.msk.f32.mxu1 %vm302_vm1, %v270_v47 }
 0x127   :  { %2801 = vmatmul.mubr.msk.f32.gmra.mrb[2].mxu1 %vm302_vm1, %v2772_v46 }
 0x128   :  { %v2775_v51 = vpop.f32.mrb[10].mxu0  ;;  %3179 = vmatpush3.bf16.msra.mxu1 %v3176_v43 }
 0x129   :  { %v280_v52 = vpop.f32.mrb[11].mxu0  ;;  %3181 = vmatprep.subr.bf16.mxu1 %v3180_v48 }
 0x12a   :  { %2803 = vmatprep.mubr.msk.f32.mxu1 %vm302_vm1, %v280_v52 }
 0x12b   :  { %2804 = vmatmul.mubr.msk.f32.gmra.mrb[4].mxu1 %vm302_vm1, %v2775_v51 }
 0x12c   :  { %3183 = vmatpush3.bf16.msra.mxu1 %v3180_v48  ;;  %2848 = vmatprep.mubr.msk.f32.mxu1 %vm302_vm1, %v3720_v33  ;;  %v2416_v48 = vld [vmem:[%s4330_s10] ss:$0 sm:$0xff] }
 0x12d   :  { %3197 = vmatprep.subr.bf16.mxu1 %v3196_v53 }
 0x12f   :  { %2849 = vmatmul.mubr.msk.f32.vlgmr.msra.gmra.mrb[6].mxu1 %vm302_vm1, %v3718_v32 }
 0x130   :  { %2851 = vmatprep.mubr.msk.f32.mxu1 %vm302_vm1, %v240_v36  ;;  %3199 = vmatpush3.bf16.msra.mxu1 %v3196_v53 }
 0x131   :  { %3201 = vmatprep.subr.bf16.mxu1 %v3200_v56 }
 0x133   :  { %2852 = vmatmul.mubr.msk.f32.gmra.mrb[8].mxu1 %vm302_vm1, %v3728_v35 }
 0x134   :  { %2854 = vmatprep.mubr.msk.f32.mxu1 %vm302_vm1, %v250_v38  ;;  %3203 = vmatpush3.bf16.msra.mxu1 %v3200_v56 }
 0x135   :  { %3205 = vmatprep.subr.bf16.mxu1 %v3204_v59 }
 0x137   :  { %2855 = vmatmul.mubr.msk.f32.gmra.mrb[10].mxu1 %vm302_vm1, %v2766_v37 }
 0x138   :  { %2857 = vmatprep.mubr.msk.f32.mxu1 %vm302_vm1, %v260_v42  ;;  %3207 = vmatpush3.bf16.msra.mxu1 %v3204_v59 }
 0x13b   :  { %2858 = vmatmul.mubr.msk.f32.gmra.mrb[12].mxu1 %vm302_vm1, %v2769_v41 }
 0x13c   :  { %2860 = vmatprep.mubr.msk.f32.mxu1 %vm302_vm1, %v270_v47 }
 0x13f   :  { %2861 = vmatmul.mubr.msk.f32.gmra.mrb[14].mxu1 %vm302_vm1, %v2772_v46 }
 0x140   :  { %2863 = vmatprep.mubr.msk.f32.mxu1 %vm302_vm1, %v280_v52 }
 0x143   :  { %2864 = vmatmul.mubr.msk.f32.gmra.mrb[16].mxu1 %vm302_vm1, %v2775_v51 }
 0x144   :  { %2908 = vmatprep.mubr.msk.f32.mxu1 %vm302_vm1, %v3720_v33 }
 0x147   :  { %2909 = vmatmul.mubr.msk.f32.vlgmr.msra.gmra.mrb[18].mxu1 %vm302_vm1, %v3718_v32 }
 0x148   :  { %2911 = vmatprep.mubr.msk.f32.mxu1 %vm302_vm1, %v240_v36  ;;  %v3880_v36 = vld [vmem:[%s4361_s24 + $0x40] sm:$0xff] }
 0x14b   :  { %2912 = vmatmul.mubr.msk.f32.gmra.mrb[20].mxu1 %vm302_vm1, %v3728_v35 }
 0x14c   :  { %2914 = vmatprep.mubr.msk.f32.mxu1 %vm302_vm1, %v250_v38  ;;  %v3886_v38 = vld [vmem:[%s4361_s24 + $0x48] sm:$0xff] }
 0x14f   :  { %2915 = vmatmul.mubr.msk.f32.gmra.mrb[22].mxu1 %vm302_vm1, %v2766_v37 }
 0x150   :  { %2917 = vmatprep.mubr.msk.f32.mxu1 %vm302_vm1, %v260_v42 }
 0x153   :  { %2918 = vmatmul.mubr.msk.f32.gmra.mrb[24].mxu1 %vm302_vm1, %v2769_v41 }
 0x154   :  { %2920 = vmatprep.mubr.msk.f32.mxu1 %vm302_vm1, %v270_v47 }
 0x157   :  { %2921 = vmatmul.mubr.msk.f32.gmra.mrb[26].mxu1 %vm302_vm1, %v2772_v46  ;;  %v3900_v46 = vld [vmem:[%s4361_s24 + $0x58] sm:$0xff] }
 0x158   :  { %2923 = vmatprep.mubr.msk.f32.mxu1 %vm302_vm1, %v280_v52 }
 0x15b   :  { %2924 = vmatmul.mubr.msk.f32.gmra.mrb[28].mxu1 %vm302_vm1, %v2775_v51 }
 0x1ea   :  { %v2790_v0 = vpop.f32.mrb[12].mxu0 }
 0x1eb   :  { %v411_v1 = vadd.f32 %v2790_v0, %v2391_v63  ;;  %v405_v3 = vpop.f32.mrb[13].mxu0 }
 0x1ec   :  { %v406_v5 = vadd.f32 %v2391_v63, %v405_v3 }
 0x1ed   :  { %v465_v8 = vmul.f32 %v411_v1, %v3826_v4 }
 0x1ee   :  { %v464_v6 = vmul.f32 %v406_v5, %v3821_v2  ;;  %v2793_v7 = vpop.f32.mrb[14].mxu0 }
 0x1ef   :  { %v421_v9 = vadd.f32 %v2793_v7, %v2391_v63  ;;  %v415_v11 = vpop.f32.mrb[15].mxu0 }
 0x1f0   :  { %v416_v13 = vadd.f32 %v2391_v63, %v415_v11  ;;  %2818 = vmatprep.mubr.msk.f32.mxu0 %vm302_vm1, %v464_v6 }
 0x1f1   :  { %2819 = vmatmul.mubr.msk.f32.vlgmr.msra.gmra.mrb[18].mxu0 %vm302_vm1, %v465_v8  ;;  %v467_v16 = vmul.f32 %v421_v9, %v3838_v12 }
 0x1f2   :  { %v466_v14 = vmul.f32 %v416_v13, %v3833_v10  ;;  %v2796_v15 = vpop.f32.mrb[16].mxu0  ;;  %3187 = vmatpush3.bf16.msra.mxu0 %v3709_v29 }
 0x1f3   :  { %v431_v17 = vadd.f32 %v2796_v15, %v2391_v63  ;;  %v425_v19 = vpop.f32.mrb[17].mxu0  ;;  %3189 = vmatprep.subr.bf16.mxu0 %v3722_v34 }
 0x1f4   :  { %v426_v21 = vadd.f32 %v2391_v63, %v425_v19  ;;  %2821 = vmatprep.mubr.msk.f32.mxu0 %vm302_vm1, %v466_v14 }
 0x1f5   :  { %2822 = vmatmul.mubr.msk.f32.gmra.mrb[20].mxu0 %vm302_vm1, %v467_v16  ;;  %v469_v24 = vmul.f32 %v431_v17, %v3854_v20 }
 0x1f6   :  { %v468_v22 = vmul.f32 %v426_v21, %v3848_v18  ;;  %v2799_v23 = vpop.f32.mrb[0].mxu1  ;;  %3191 = vmatpush3.bf16.msra.mxu0 %v3722_v34 }
 0x1f7   :  { %v441_v25 = vadd.f32 %v2799_v23, %v2391_v63  ;;  %v435_v27 = vpop.f32.mrb[1].mxu1  ;;  %3193 = vmatprep.subr.bf16.mxu0 %v3810_v62 }
 0x1f8   :  { %v436_v30 = vadd.f32 %v2391_v63, %v435_v27  ;;  %2824 = vmatprep.mubr.msk.f32.mxu0 %vm302_vm1, %v468_v22 }
 0x1f9   :  { %2825 = vmatmul.mubr.msk.f32.gmra.mrb[22].mxu0 %vm302_vm1, %v469_v24  ;;  %v471_v33 = vmul.f32 %v441_v25, %v3870_v28 }
 0x1fa   :  { %v470_v31 = vmul.f32 %v436_v30, %v3864_v26  ;;  %v2802_v32 = vpop.f32.mrb[2].mxu1  ;;  %3195 = vmatpush3.bf16.msra.mxu0 %v3810_v62 }
 0x1fb   :  { %v451_v35 = vadd.f32 %v2802_v32, %v2391_v63  ;;  %v445_v37 = vpop.f32.mrb[3].mxu1  ;;  %3209 = vmatprep.subr.bf16.mxu0 %v3709_v29 }
 0x1fc   :  { %v446_v39 = vadd.f32 %v2391_v63, %v445_v37  ;;  %2827 = vmatprep.mubr.msk.f32.mxu0 %vm302_vm1, %v470_v31 }
 0x1fd   :  { %2828 = vmatmul.mubr.msk.f32.gmra.mrb[24].mxu0 %vm302_vm1, %v471_v33  ;;  %v473_v42 = vmul.f32 %v451_v35, %v3886_v38 }
 0x1fe   :  { %v472_v40 = vmul.f32 %v446_v39, %v3880_v36  ;;  %v2805_v41 = vpop.f32.mrb[4].mxu1 }
 0x1ff   :  { %v461_v43 = vadd.f32 %v2805_v41, %v2391_v63  ;;  %v455_v45 = vpop.f32.mrb[5].mxu1 }
 0x200   :  { %v456_v47 = vadd.f32 %v2391_v63, %v455_v45  ;;  %2830 = vmatprep.mubr.msk.f32.mxu0 %vm302_vm1, %v472_v40 }
 0x201   :  { %2831 = vmatmul.mubr.msk.f32.gmra.mrb[26].mxu0 %vm302_vm1, %v473_v42  ;;  %v475_v51 = vmul.f32 %v461_v43, %v3900_v46 }
 0x202   :  { %v474_v49 = vmul.f32 %v456_v47, %v3895_v44  ;;  %v2850_v50 = vpop.f32.mrb[6].mxu1 }
 0x203   :  { %v722_v52 = vadd.f32 %v2850_v50, %v2416_v48  ;;  %v716_v53 = vpop.f32.mrb[7].mxu1 }
 0x204   :  { %v717_v54 = vadd.f32 %v2416_v48, %v716_v53  ;;  %2833 = vmatprep.mubr.msk.f32.mxu0 %vm302_vm1, %v474_v49 }
 0x205   :  { %2834 = vmatmul.mubr.msk.f32.gmra.mrb[28].mxu0 %vm302_vm1, %v475_v51  ;;  %v776_v57 = vmul.f32 %v722_v52, %v3826_v4 }
 0x206   :  { %v775_v55 = vmul.f32 %v717_v54, %v3821_v2  ;;  %v2853_v56 = vpop.f32.mrb[8].mxu1 }
 0x207   :  { %v732_v58 = vadd.f32 %v2853_v56, %v2416_v48  ;;  %v726_v59 = vpop.f32.mrb[9].mxu1 }
 0x208   :  { %v727_v60 = vadd.f32 %v2416_v48, %v726_v59  ;;  %2878 = vmatprep.mubr.msk.f32.mxu0 %vm302_vm1, %v775_v55 }
 0x209   :  { %2879 = vmatmul.mubr.msk.f32.vlgmr.msra.gmra.mrb[30].mxu0 %vm302_vm1, %v776_v57  ;;  %v778_v0 = vmul.f32 %v732_v58, %v3838_v12 }
 0x20a   :  { %v777_v61 = vmul.f32 %v727_v60, %v3833_v10  ;;  %v2856_v63 = vpop.f32.mrb[10].mxu1  ;;  %3211 = vmatpush3.bf16.msra.mxu0 %v3709_v29 }
 0x20b   :  { %v742_v1 = vadd.f32 %v2856_v63, %v2416_v48  ;;  %v736_v3 = vpop.f32.mrb[11].mxu1  ;;  %3213 = vmatprep.subr.bf16.mxu0 %v3722_v34 }
 0x20c   :  { %v737_v5 = vadd.f32 %v2416_v48, %v736_v3  ;;  %2881 = vmatprep.mubr.msk.f32.mxu0 %vm302_vm1, %v777_v61 }
 0x20d   :  { %2882 = vmatmul.mubr.msk.f32.gmra.mrb[32].mxu0 %vm302_vm1, %v778_v0  ;;  %v780_v8 = vmul.f32 %v742_v1, %v3854_v20 }
 0x20e   :  { %v779_v6 = vmul.f32 %v737_v5, %v3848_v18  ;;  %v2859_v7 = vpop.f32.mrb[12].mxu1  ;;  %3215 = vmatpush3.bf16.msra.mxu0 %v3722_v34 }
 0x20f   :  { %v752_v9 = vadd.f32 %v2859_v7, %v2416_v48  ;;  %v746_v29 = vpop.f32.mrb[13].mxu1  ;;  %3217 = vmatprep.subr.bf16.mxu0 %v3810_v62 }
 0x210   :  { %v747_v11 = vadd.f32 %v2416_v48, %v746_v29  ;;  %2884 = vmatprep.mubr.msk.f32.mxu0 %vm302_vm1, %v779_v6 }
 0x211   :  { %2885 = vmatmul.mubr.msk.f32.gmra.mrb[34].mxu0 %vm302_vm1, %v780_v8  ;;  %v782_v15 = vmul.f32 %v752_v9, %v3870_v28 }
 0x212   :  { %v781_v13 = vmul.f32 %v747_v11, %v3864_v26  ;;  %v2862_v14 = vpop.f32.mrb[14].mxu1  ;;  %3219 = vmatpush3.bf16.msra.mxu0 %v3810_v62  ;;  %v2441_v62 = vld [vmem:[%s4332_s12] ss:$0 sm:$0xff] }
 0x213   :  { %v762_v16 = vadd.f32 %v2862_v14, %v2416_v48  ;;  %v756_v34 = vpop.f32.mrb[15].mxu1 }
 0x214   :  { %v757_v17 = vadd.f32 %v2416_v48, %v756_v34  ;;  %2887 = vmatprep.mubr.msk.f32.mxu0 %vm302_vm1, %v781_v13 }
 0x215   :  { %2888 = vmatmul.mubr.msk.f32.gmra.mrb[36].mxu0 %vm302_vm1, %v782_v15  ;;  %v784_v22 = vmul.f32 %v762_v16, %v3886_v38 }
 0x216   :  { %v783_v19 = vmul.f32 %v757_v17, %v3880_v36  ;;  %v2865_v21 = vpop.f32.mrb[16].mxu1 }
 0x217   :  { %v772_v23 = vadd.f32 %v2865_v21, %v2416_v48  ;;  %v766_v24 = vpop.f32.mrb[17].mxu1 }
 0x218   :  { %v767_v25 = vadd.f32 %v2416_v48, %v766_v24  ;;  %2890 = vmatprep.mubr.msk.f32.mxu0 %vm302_vm1, %v783_v19 }
 0x219   :  { %2891 = vmatmul.mubr.msk.f32.gmra.mrb[38].mxu0 %vm302_vm1, %v784_v22  ;;  %v786_v31 = vmul.f32 %v772_v23, %v3900_v46 }
 0x21a   :  { %v785_v27 = vmul.f32 %v767_v25, %v3895_v44  ;;  %v2910_v30 = vpop.f32.mrb[18].mxu1 }
 0x21b   :  { %v1033_v32 = vadd.f32 %v2910_v30, %v2441_v62  ;;  %v1027_v33 = vpop.f32.mrb[19].mxu1 }
 0x21c   :  { %v1028_v35 = vadd.f32 %v2441_v62, %v1027_v33  ;;  %2893 = vmatprep.mubr.msk.f32.mxu0 %vm302_vm1, %v785_v27  ;;  %v1264_v27 = vld [vmem:[%s4326_s6 + $0x28] sm:$0xff] }
 0x21d   :  { %2894 = vmatmul.mubr.msk.f32.gmra.mrb[40].mxu0 %vm302_vm1, %v786_v31  ;;  %v1087_v40 = vmul.f32 %v1033_v32, %v3826_v4 }
 0x21e   :  { %v1086_v37 = vmul.f32 %v1028_v35, %v3821_v2  ;;  %v2913_v39 = vpop.f32.mrb[20].mxu1 }
 0x21f   :  { %v1043_v41 = vadd.f32 %v2913_v39, %v2441_v62  ;;  %v1037_v42 = vpop.f32.mrb[21].mxu1 }
 0x220   :  { %v1038_v43 = vadd.f32 %v2441_v62, %v1037_v42  ;;  %2938 = vmatprep.mubr.msk.f32.mxu0 %vm302_vm1, %v1086_v37 }
 0x221   :  { %2939 = vmatmul.mubr.msk.f32.vlgmr.msra.gmra.mrb[42].mxu0 %vm302_vm1, %v1087_v40  ;;  %v1089_v48 = vmul.f32 %v1043_v41, %v3838_v12 }
 0x222   :  { %v1088_v45 = vmul.f32 %v1038_v43, %v3833_v10  ;;  %v2916_v47 = vpop.f32.mrb[22].mxu1 }
 0x223   :  { %v1053_v49 = vadd.f32 %v2916_v47, %v2441_v62  ;;  %v1047_v50 = vpop.f32.mrb[23].mxu1 }
 0x224   :  { %v1048_v51 = vadd.f32 %v2441_v62, %v1047_v50  ;;  %2941 = vmatprep.mubr.msk.f32.mxu0 %vm302_vm1, %v1088_v45 }
 0x225   :  { %2942 = vmatmul.mubr.msk.f32.gmra.mrb[44].mxu0 %vm302_vm1, %v1089_v48  ;;  %v1091_v54 = vmul.f32 %v1053_v49, %v3854_v20 }
 0x226   :  { %v1090_v52 = vmul.f32 %v1048_v51, %v3848_v18  ;;  %v2919_v53 = vpop.f32.mrb[24].mxu1 }
 0x227   :  { %v1063_v55 = vadd.f32 %v2919_v53, %v2441_v62  ;;  %v1057_v56 = vpop.f32.mrb[25].mxu1 }
 0x228   :  { %v1058_v57 = vadd.f32 %v2441_v62, %v1057_v56  ;;  %2944 = vmatprep.mubr.msk.f32.mxu0 %vm302_vm1, %v1090_v52 }
 0x229   :  { %2945 = vmatmul.mubr.msk.f32.gmra.mrb[46].mxu0 %vm302_vm1, %v1091_v54  ;;  %v1093_v60 = vmul.f32 %v1063_v55, %v3870_v28 }
 0x22a   :  { %v1092_v58 = vmul.f32 %v1058_v57, %v3864_v26  ;;  %v2922_v59 = vpop.f32.mrb[26].mxu1 }
 0x22b   :  { %v1073_v61 = vadd.f32 %v2922_v59, %v2441_v62  ;;  %v1067_v63 = vpop.f32.mrb[27].mxu1 }
 0x22c   :  { %v1068_v0 = vadd.f32 %v2441_v62, %v1067_v63  ;;  %2947 = vmatprep.mubr.msk.f32.mxu0 %vm302_vm1, %v1092_v58 }
 0x22d   :  { %2948 = vmatmul.mubr.msk.f32.gmra.mrb[48].mxu0 %vm302_vm1, %v1093_v60  ;;  %v1095_v5 = vmul.f32 %v1073_v61, %v3886_v38 }
 0x22e   :  { %v1094_v1 = vmul.f32 %v1068_v0, %v3880_v36  ;;  %v2925_v3 = vpop.f32.mrb[28].mxu1 }
 0x22f   :  { %v1083_v6 = vadd.f32 %v2925_v3, %v2441_v62  ;;  %v1077_v7 = vpop.f32.mrb[29].mxu1 }
 0x230   :  { %v1078_v8 = vadd.f32 %v2441_v62, %v1077_v7  ;;  %2950 = vmatprep.mubr.msk.f32.mxu0 %vm302_vm1, %v1094_v1 }
 0x231   :  { %2951 = vmatmul.mubr.msk.f32.gmra.mrb[50].mxu0 %vm302_vm1, %v1095_v5  ;;  %v1097_v29 = vmul.f32 %v1083_v6, %v3900_v46 }
 0x232   :  { %v1096_v9 = vmul.f32 %v1078_v8, %v3895_v44  ;;  %v1259_v8 = vld [vmem:[%s4326_s6] sm:$0xff] }
 0x234   :  { %2953 = vmatprep.mubr.msk.f32.mxu0 %vm302_vm1, %v1096_v9 }
 0x235   :  { %2954 = vmatmul.mubr.msk.f32.gmra.mrb[52].mxu0 %vm302_vm1, %v1097_v29  ;;  %v1260_v29 = vld [vmem:[%s4326_s6 + $0x8] sm:$0xff] }
 0x2c4   :  { %v3967_v11 = vpop.f32.mrb[18].mxu0 }
 0x2c5   :  { %v578_v13 = vpop.f32.mrb[19].mxu0 }
 0x2c6   :  { %2980 = vmatprep.mubr.msk.f32.mxu1 %vm1271_vm2, %v578_v13 }
 0x2c8   :  { %v3970_v14 = vpop.f32.mrb[20].mxu0 }
 0x2c9   :  { %v3972_v15 = vpop.f32.mrb[21].mxu0 }
 0x2cc   :  { %v3974_v16 = vpop.f32.mrb[22].mxu0 }
 0x2cd   :  { %v3976_v34 = vpop.f32.mrb[23].mxu0 }
 0x2d0   :  { %v3978_v17 = vpop.f32.mrb[24].mxu0 }
 0x2d1   :  { %v3980_v19 = vpop.f32.mrb[25].mxu0 }
 0x2d4   :  { %v3982_v21 = vpop.f32.mrb[26].mxu0 }
 0x2d5   :  { %v3984_v22 = vpop.f32.mrb[27].mxu0 }
 0x2d8   :  { %v3986_v23 = vpop.f32.mrb[28].mxu0 }
 0x2d9   :  { %v3988_v24 = vpop.f32.mrb[29].mxu0 }
 0x2dc   :  { %v2880_v25 = vpop.f32.mrb[30].mxu0 }
 0x2dd   :  { %v889_v62 = vpop.f32.mrb[31].mxu0 }
 0x2de   :  { %v3220_v30 = vpack.c.bf16 %v2880_v25, %v889_v62 }
 0x2e0   :  { %v2883_v31 = vpop.f32.mrb[32].mxu0  ;;  %3222 = vmatprep.subr.msk.bf16.mxu1 %vm3992_vm3, %v3220_v30 }
 0x2e1   :  { %v899_v32 = vpop.f32.mrb[33].mxu0  ;;  %3225 = vmatpush3.bf16.xpose.msk.msra.mxu1 %vm3992_vm3, %v3220_v30 }
 0x2e2   :  { %v3226_v33 = vpack.c.bf16 %v2883_v31, %v899_v32  ;;  %v1265_v32 = vld [vmem:[%s4326_s6 + $0x30] sm:$0xff] }
 0x2e4   :  { %v2886_v35 = vpop.f32.mrb[34].mxu0  ;;  %3228 = vmatprep.subr.msk.bf16.mxu1 %vm3992_vm3, %v3226_v33 }
 0x2e5   :  { %v909_v37 = vpop.f32.mrb[35].mxu0 }
 0x2e6   :  { %v3232_v39 = vpack.c.bf16 %v2886_v35, %v909_v37 }
 0x2e8   :  { %v2889_v40 = vpop.f32.mrb[36].mxu0 }
 0x2e9   :  { %v919_v41 = vpop.f32.mrb[37].mxu0  ;;  %3231 = vmatpush3.bf16.xpose.msk.msra.mxu1 %vm3992_vm3, %v3226_v33 }
 0x2ea   :  { %v3238_v42 = vpack.c.bf16 %v2889_v40, %v919_v41  ;;  %3234 = vmatprep.subr.msk.bf16.mxu1 %vm3992_vm3, %v3232_v39  ;;  %v1266_v40 = vld [vmem:[%s4326_s6 + $0x38] sm:$0xff] }
 0x2ec   :  { %v2892_v43 = vpop.f32.mrb[38].mxu0 }
 0x2ed   :  { %v929_v45 = vpop.f32.mrb[39].mxu0 }
 0x2ee   :  { %v3244_v47 = vpack.c.bf16 %v2892_v43, %v929_v45  ;;  %v1267_v43 = vld [vmem:[%s4326_s6 + $0x40] sm:$0xff] }
 0x2f0   :  { %v2895_v48 = vpop.f32.mrb[40].mxu0 }
 0x2f1   :  { %v939_v49 = vpop.f32.mrb[41].mxu0  ;;  %3237 = vmatpush3.bf16.xpose.msk.msra.mxu1 %vm3992_vm3, %v3232_v39 }
 0x2f2   :  { %v3250_v50 = vpack.c.bf16 %v2895_v48, %v939_v49  ;;  %3240 = vmatprep.subr.msk.bf16.mxu1 %vm3992_vm3, %v3238_v42 }
 0x2f4   :  { %v2940_v51 = vpop.f32.mrb[42].mxu0 }
 0x2f5   :  { %v1200_v52 = vpop.f32.mrb[43].mxu0 }
 0x2f6   :  { %v3256_v53 = vpack.c.bf16 %v2940_v51, %v1200_v52 }
 0x2f8   :  { %v2943_v54 = vpop.f32.mrb[44].mxu0  ;;  %3257 = vmatprep.subr.bf16.mxu0 %v3256_v53 }
 0x2f9   :  { %v1210_v55 = vpop.f32.mrb[45].mxu0  ;;  %3243 = vmatpush3.bf16.xpose.msk.msra.mxu1 %vm3992_vm3, %v3238_v42  ;;  %3259 = vmatpush3.bf16.msra.mxu0 %v3256_v53  ;;  %v1269_v53 = vld [vmem:[%s4326_s6 + $0x50] sm:$0xff] }
 0x2fa   :  { %v3260_v56 = vpack.c.bf16 %v2943_v54, %v1210_v55  ;;  %3246 = vmatprep.subr.msk.bf16.mxu1 %vm3992_vm3, %v3244_v47 }
 0x2fc   :  { %v2946_v57 = vpop.f32.mrb[46].mxu0  ;;  %3261 = vmatprep.subr.bf16.mxu0 %v3260_v56 }
 0x2fd   :  { %v1220_v58 = vpop.f32.mrb[47].mxu0  ;;  %3263 = vmatpush3.bf16.msra.mxu0 %v3260_v56 }
 0x2fe   :  { %v3264_v59 = vpack.c.bf16 %v2946_v57, %v1220_v58  ;;  %v1270_v58 = vld [vmem:[%s4326_s6 + $0x58] sm:$0xff] }
 0x300   :  { %v2949_v60 = vpop.f32.mrb[48].mxu0  ;;  %3265 = vmatprep.subr.bf16.mxu0 %v3264_v59 }
 0x301   :  { %v1230_v61 = vpop.f32.mrb[49].mxu0  ;;  %3249 = vmatpush3.bf16.xpose.msk.msra.mxu1 %vm3992_vm3, %v3244_v47  ;;  %3267 = vmatpush3.bf16.msra.mxu0 %v3264_v59 }
 0x302   :  { %v3268_v63 = vpack.c.bf16 %v2949_v60, %v1230_v61  ;;  %3252 = vmatprep.subr.msk.bf16.mxu1 %vm3992_vm3, %v3250_v50 }
 0x304   :  { %v2952_v0 = vpop.f32.mrb[50].mxu0  ;;  %3269 = vmatprep.subr.bf16.mxu0 %v3268_v63 }
 0x305   :  { %v1240_v1 = vpop.f32.mrb[51].mxu0  ;;  %3271 = vmatpush3.bf16.msra.mxu0 %v3268_v63 }
 0x306   :  { %v3272_v3 = vpack.c.bf16 %v2952_v0, %v1240_v1 }
 0x308   :  { %v2955_v5 = vpop.f32.mrb[52].mxu0  ;;  %3273 = vmatprep.subr.bf16.mxu0 %v3272_v3 }
 0x309   :  { %v1250_v6 = vpop.f32.mrb[53].mxu0  ;;  %3255 = vmatpush3.bf16.xpose.msk.msra.mxu1 %vm3992_vm3, %v3250_v50  ;;  %3275 = vmatpush3.bf16.msra.mxu0 %v3272_v3  ;;  %v1268_v50 = vld [vmem:[%s4326_s6 + $0x48] sm:$0xff] }
 0x30a   :  { %v3276_v7 = vpack.c.bf16 %v2955_v5, %v1250_v6 }
 0x30c   :  { %3277 = vmatprep.subr.bf16.mxu0 %v3276_v7 }
 0x30d   :  { %3279 = vmatpush3.bf16.msra.mxu0 %v3276_v7 }
 0x310   :  { %2981 = vmatmul.mubr.msk.f32.vlgmr.msra.gmra.mrb[30].mxu1 %vm1271_vm2, %v3967_v11 }
 0x311   :  { %2983 = vmatprep.mubr.msk.f32.mxu1 %vm1271_vm2, %v3972_v15 }
 0x314   :  { %2984 = vmatmul.mubr.msk.f32.gmra.mrb[32].mxu1 %vm1271_vm2, %v3970_v14  ;;  %v1261_v14 = vld [vmem:[%s4326_s6 + $0x10] sm:$0xff] }
 0x315   :  { %2986 = vmatprep.mubr.msk.f32.mxu1 %vm1271_vm2, %v3976_v34 }
 0x318   :  { %2987 = vmatmul.mubr.msk.f32.gmra.mrb[34].mxu1 %vm1271_vm2, %v3974_v16 }
 0x319   :  { %2989 = vmatprep.mubr.msk.f32.mxu1 %vm1271_vm2, %v3980_v19 }
 0x31c   :  { %2990 = vmatmul.mubr.msk.f32.gmra.mrb[36].mxu1 %vm1271_vm2, %v3978_v17  ;;  %v1262_v17 = vld [vmem:[%s4326_s6 + $0x18] sm:$0xff] }
 0x31d   :  { %2992 = vmatprep.mubr.msk.f32.mxu1 %vm1271_vm2, %v3984_v22  ;;  %v1263_v22 = vld [vmem:[%s4326_s6 + $0x20] sm:$0xff] }
 0x320   :  { %2993 = vmatmul.mubr.msk.f32.gmra.mrb[38].mxu1 %vm1271_vm2, %v3982_v21 }
 0x321   :  { %2995 = vmatprep.mubr.msk.f32.mxu1 %vm1271_vm2, %v3988_v24 }
 0x324   :  { %2996 = vmatmul.mubr.msk.f32.gmra.mrb[40].mxu1 %vm1271_vm2, %v3986_v23 }
 0x3e3   :  { %v2982_v9 = vpop.f32.mrb[30].mxu1 }
 0x3e4   :  { %v1410_v11 = vpop.f32.mrb[31].mxu1  ;;  %v4051_v15 = vadd.f32 %v2982_v9, %v1260_v29 }
 0x3e5   :  { %v1411_v13 = vadd.f32 %v1410_v11, %v1259_v8 }
 0x3e6   :  { %v1473_v62 = vsel %vm1469_vm4, %v4051_v15, -inf }
 0x3e7   :  { %v2985_v16 = vpop.f32.mrb[32].mxu1  ;;  %v1470_v34 = vsel %vm1469_vm4, %v1411_v13, -inf }
 0x3e8   :  { %v1420_v19 = vpop.f32.mrb[33].mxu1  ;;  %1471 = vmax.xlane.f32.xlu0 %v1470_v34  ;;  %v1426_v23 = vadd.f32 %v2985_v16, %v1262_v17 }
 0x3e9   :  { %v1421_v21 = vadd.f32 %v1420_v19, %v1261_v14 }
 0x3ea   :  { %v1479_v37 = vsel %vm1469_vm4, %v1426_v23, -inf }
 0x3eb   :  { %v2988_v24 = vpop.f32.mrb[34].mxu1  ;;  %v1476_v25 = vsel %vm1469_vm4, %v1421_v21, -inf }
 0x3ec   :  { %v1430_v30 = vpop.f32.mrb[35].mxu1  ;;  %1477 = vmax.xlane.f32.xlu1 %v1476_v25  ;;  %1474 = vmax.xlane.f32.xlu0 %v1473_v62  ;;  %v1436_v33 = vadd.f32 %v2988_v24, %v1264_v27 }
 0x3ed   :  { %v1431_v31 = vadd.f32 %v1430_v30, %v1263_v22 }
 0x3ee   :  { %v1485_v48 = vsel %vm1469_vm4, %v1436_v33, -inf }
 0x3ef   :  { %v2991_v35 = vpop.f32.mrb[36].mxu1  ;;  %v1482_v39 = vsel %vm1469_vm4, %v1431_v31, -inf }
 0x3f0   :  { %v1440_v41 = vpop.f32.mrb[37].mxu1  ;;  %1480 = vmax.xlane.f32.xlu1 %v1479_v37  ;;  %1483 = vmax.xlane.f32.xlu0 %v1482_v39  ;;  %v1446_v45 = vadd.f32 %v2991_v35, %v1266_v40 }
 0x3f1   :  { %v1441_v42 = vadd.f32 %v1440_v41, %v1265_v32 }
 0x3f2   :  { %v1491_v56 = vsel %vm1469_vm4, %v1446_v45, -inf }
 0x3f3   :  { %v2994_v47 = vpop.f32.mrb[38].mxu1  ;;  %v1488_v49 = vsel %vm1469_vm4, %v1441_v42, -inf }
 0x3f4   :  { %v1450_v51 = vpop.f32.mrb[39].mxu1  ;;  %1486 = vmax.xlane.f32.xlu1 %v1485_v48  ;;  %1489 = vmax.xlane.f32.xlu0 %v1488_v49  ;;  %v4085_v54 = vadd.f32 %v2994_v47, %v1268_v50 }
 0x3f5   :  { %v1451_v52 = vadd.f32 %v1450_v51, %v1267_v43 }
 0x3f6   :  { %v1497_v63 = vsel %vm1469_vm4, %v4085_v54, -inf }
 0x3f7   :  { %v2997_v55 = vpop.f32.mrb[40].mxu1  ;;  %v1494_v57 = vsel %vm1469_vm4, %v1451_v52, -inf }
 0x3f8   :  { %v1460_v59 = vpop.f32.mrb[41].mxu1  ;;  %1492 = vmax.xlane.f32.xlu1 %v1491_v56  ;;  %1495 = vmax.xlane.f32.xlu0 %v1494_v57  ;;  %v4092_v61 = vadd.f32 %v2997_v55, %v1270_v58 }
 0x3f9   :  { %v1461_v60 = vadd.f32 %v1460_v59, %v1269_v53 }
 0x3fa   :  { %v1503_v1 = vsel %vm1469_vm4, %v4092_v61, -inf }
 0x3fb   :  { %v1500_v0 = vsel %vm1469_vm4, %v1461_v60, -inf }
 0x3fc   :  { %1498 = vmax.xlane.f32.xlu1 %v1497_v63  ;;  %1501 = vmax.xlane.f32.xlu0 %v1500_v0 }
 0x400   :  { %1504 = vmax.xlane.f32.xlu1 %v1503_v1 }
 0x475   :  { %v1472_v3 = vpop.xlane.xlu0 %1471 }
 0x476   :  { %v1506_v5 = vsub.f32 %v1411_v13, %v1472_v3 }
 0x478   :  { %v1518_v6 = vmul.f32 1.442695, %v1506_v5 }
 0x479   :  { %v1478_v7 = vpop.xlane.xlu1 %1477  ;;  %v1475_v8 = vpop.xlane.xlu0 %1474 }
 0x47a   :  { %3363 = vpow2.f32 %v1518_v6  ;;  %v1508_v9 = vsub.f32 %v1421_v21, %v1478_v7  ;;  %v1507_v29 = vsub.f32 %v4051_v15, %v1475_v8 }
 0x47c   :  { %v1522_v11 = vmul.f32 1.442695, %v1508_v9  ;;  %v1520_v14 = vmul.f32 1.442695, %v1507_v29 }
 0x47d   :  { %v1481_v16 = vpop.xlane.xlu1 %1480  ;;  %v1484_v34 = vpop.xlane.xlu0 %1483 }
 0x47e   :  { %3365 = vpow2.f32 %v1522_v11  ;;  %v1509_v17 = vsub.f32 %v1426_v23, %v1481_v16  ;;  %v1510_v19 = vsub.f32 %v1431_v31, %v1484_v34 }
 0x47f   :  { %3367 = vpow2.f32 %v1520_v14  ;;  %v1763_v14 = vld [vmem:[#allocation5] sm:$0xff] }
 0x480   :  { %v1524_v22 = vmul.f32 1.442695, %v1509_v17  ;;  %v1526_v24 = vmul.f32 1.442695, %v1510_v19  ;;  %3040 = vmatprep.subr.mxu0 %v1763_v14 }
 0x481   :  { %v1487_v25 = vpop.xlane.xlu1 %1486  ;;  %v1490_v62 = vpop.xlane.xlu0 %1489 }
 0x482   :  { %3369 = vpow2.f32 %v1524_v22  ;;  %v1511_v13 = vsub.f32 %v1436_v33, %v1487_v25  ;;  %v1512_v27 = vsub.f32 %v1441_v42, %v1490_v62 }
 0x483   :  { %3371 = vpow2.f32 %v1526_v24 }
 0x484   :  { %v4100_v30 = vpop.eup %3363  ;;  %v1528_v21 = vmul.f32 1.442695, %v1511_v13  ;;  %v1530_v15 = vmul.f32 1.442695, %v1512_v27 }
 0x485   :  { %v1493_v32 = vpop.xlane.xlu1 %1492  ;;  %v1496_v35 = vpop.xlane.xlu0 %1495  ;;  %v1542_v37 = vsel %vm1469_vm4, %v4100_v30, 0.0 }
 0x486   :  { %3373 = vpow2.f32 %v1528_v21  ;;  %v1513_v23 = vsub.f32 %v1446_v45, %v1493_v32  ;;  %v1514_v31 = vsub.f32 %v1451_v52, %v1496_v35  ;;  %1543 = vadd.xlane.f32.xlu0 %v1542_v37 }
 0x487   :  { %3375 = vpow2.f32 %v1530_v15 }
 0x488   :  { %v4104_v39 = vpop.eup %3365  ;;  %v1532_v40 = vmul.f32 1.442695, %v1513_v23  ;;  %v1534_v33 = vmul.f32 1.442695, %v1514_v31 }
 0x489   :  { %v4106_v41 = vpop.eup %3367  ;;  %v1499_v42 = vpop.xlane.xlu1 %1498  ;;  %v1548_v47 = vsel %vm1469_vm4, %v4104_v39, 0.0 }
 0x48a   :  { %v1502_v43 = vpop.xlane.xlu0 %1501  ;;  %3377 = vpow2.f32 %v1532_v40  ;;  %v1515_v48 = vsub.f32 %v4085_v54, %v1499_v42  ;;  %1549 = vadd.xlane.f32.xlu0 %v1548_v47  ;;  %v1545_v45 = vsel %vm1469_vm4, %v4106_v41, 0.0 }
 0x48b   :  { %v1516_v49 = vsub.f32 %v1461_v60, %v1502_v43  ;;  %3379 = vpow2.f32 %v1534_v33  ;;  %1546 = vadd.xlane.f32.xlu1 %v1545_v45 }
 0x48c   :  { %v4113_v50 = vpop.eup %3369  ;;  %v1536_v51 = vmul.f32 1.442695, %v1515_v48 }
 0x48d   :  { %v1538_v52 = vmul.f32 1.442695, %v1516_v49  ;;  %v4115_v53 = vpop.eup %3371  ;;  %v1505_v55 = vpop.xlane.xlu1 %1504  ;;  %v1551_v56 = vsel %vm1469_vm4, %v4113_v50, 0.0 }
 0x48e   :  { %3381 = vpow2.f32 %v1536_v51  ;;  %v1517_v54 = vsub.f32 %v4092_v61, %v1505_v55  ;;  %v1554_v57 = vsel %vm1469_vm4, %v4115_v53, 0.0 }
 0x48f   :  { %3383 = vpow2.f32 %v1538_v52  ;;  %1552 = vadd.xlane.f32.xlu1 %v1551_v56  ;;  %1555 = vadd.xlane.f32.xlu0 %v1554_v57 }
 0x490   :  { %v4122_v58 = vpop.eup %3373  ;;  %v1540_v59 = vmul.f32 1.442695, %v1517_v54 }
 0x491   :  { %v4124_v60 = vpop.eup %3375  ;;  %v1557_v63 = vsel %vm1469_vm4, %v4122_v58, 0.0 }
 0x492   :  { %3385 = vpow2.f32 %v1540_v59  ;;  %v1560_v0 = vsel %vm1469_vm4, %v4124_v60, 0.0 }
 0x493   :  { %1558 = vadd.xlane.f32.xlu1 %v1557_v63  ;;  %1561 = vadd.xlane.f32.xlu0 %v1560_v0 }
 0x494   :  { %v4130_v61 = vpop.eup %3377 }
 0x495   :  { %v4132_v1 = vpop.eup %3379  ;;  %v1563_v3 = vsel %vm1469_vm4, %v4130_v61, 0.0 }
 0x496   :  { %v1566_v5 = vsel %vm1469_vm4, %v4132_v1, 0.0 }
 0x497   :  { %1564 = vadd.xlane.f32.xlu1 %v1563_v3  ;;  %1567 = vadd.xlane.f32.xlu0 %v1566_v5 }
 0x498   :  { %v4138_v6 = vpop.eup %3381 }
 0x499   :  { %v4140_v7 = vpop.eup %3383  ;;  %v1569_v8 = vsel %vm1469_vm4, %v4138_v6, 0.0 }
 0x49a   :  { %v1572_v9 = vsel %vm1469_vm4, %v4140_v7, 0.0 }
 0x49b   :  { %1570 = vadd.xlane.f32.xlu1 %v1569_v8  ;;  %1573 = vadd.xlane.f32.xlu0 %v1572_v9  ;;  %v1925_v9 = vld [vmem:[%s4364_s29] sm:$0xff] }
 0x49c   :  { %v4146_v29 = vpop.eup %3385  ;;  %3084 = vmatprep.mubr.msk.f32.mxu1 %vm1469_vm4, %v1925_v9  ;;  %v2220_v9 = vld [vmem:[%s4337_s17 + $0x40] sm:$0xff] }
 0x49d   :  { %v1575_v11 = vsel %vm1469_vm4, %v4146_v29, 0.0 }
 0x49f   :  { %1576 = vadd.xlane.f32.xlu1 %v1575_v11 }
 0x513   :  { %v1544_v16 = vpop.xlane.xlu0 %1543 }
 0x514   :  { %3387 = vrcp.f32 %v1544_v16 }
 0x517   :  { %v1550_v34 = vpop.xlane.xlu0 %1549 }
 0x518   :  { %v1547_v17 = vpop.xlane.xlu1 %1546  ;;  %3389 = vrcp.f32 %v1550_v34 }
 0x519   :  { %3391 = vrcp.f32 %v1547_v17 }
 0x51c   :  { %v1553_v19 = vpop.xlane.xlu1 %1552  ;;  %v1556_v22 = vpop.xlane.xlu0 %1555 }
 0x51d   :  { %3393 = vrcp.f32 %v1553_v19 }
 0x51e   :  { %v3388_v24 = vpop.eup %3387  ;;  %3395 = vrcp.f32 %v1556_v22 }
 0x51f   :  { %v1579_v25 = vmul.f32 %v3388_v24, %v4100_v30 }
 0x520   :  { %v1559_v62 = vpop.xlane.xlu1 %1558  ;;  %v1562_v13 = vpop.xlane.xlu0 %1561 }
 0x521   :  { %3397 = vrcp.f32 %v1559_v62  ;;  %3022 = vmatprep.mubr.msk.f32.mxu0 %vm1469_vm4, %v1579_v25 }
 0x522   :  { %v3390_v27 = vpop.eup %3389  ;;  %3399 = vrcp.f32 %v1562_v13 }
 0x523   :  { %v3392_v21 = vpop.eup %3391  ;;  %v1583_v15 = vmul.f32 %v3390_v27, %v4104_v39 }
 0x524   :  { %v1581_v32 = vmul.f32 %v3392_v21, %v4106_v41  ;;  %v1565_v35 = vpop.xlane.xlu1 %1564  ;;  %v1568_v37 = vpop.xlane.xlu0 %1567 }
 0x525   :  { %3401 = vrcp.f32 %v1565_v35 }
 0x526   :  { %3403 = vrcp.f32 %v1568_v37  ;;  %3023 = vmatmul.mubr.msk.f32.vlgmr.msra.gmra.mrb[54].mxu0 %vm1469_vm4, %v1581_v32 }
 0x527   :  { %v3394_v23 = vpop.eup %3393  ;;  %3025 = vmatprep.mubr.msk.f32.mxu0 %vm1469_vm4, %v1583_v15  ;;  %3041 = vmatpush3.msra.mxu0 %v1763_v14 }
 0x528   :  { %v3396_v30 = vpop.eup %3395  ;;  %v1571_v31 = vpop.xlane.xlu1 %1570  ;;  %v1585_v33 = vmul.f32 %v3394_v23, %v4113_v50 }
 0x529   :  { %v1574_v40 = vpop.xlane.xlu0 %1573  ;;  %3405 = vrcp.f32 %v1571_v31  ;;  %v1587_v39 = vmul.f32 %v3396_v30, %v4115_v53 }
 0x52a   :  { %3407 = vrcp.f32 %v1574_v40  ;;  %3026 = vmatmul.mubr.msk.f32.gmra.mrb[56].mxu0 %vm1469_vm4, %v1585_v33 }
 0x52b   :  { %v3398_v41 = vpop.eup %3397  ;;  %3028 = vmatprep.mubr.msk.f32.mxu0 %vm1469_vm4, %v1587_v39  ;;  %v2022_v39 = vld [vmem:[%s4333_s13 + $0x10] sm:$0xff] }
 0x52c   :  { %v3400_v42 = vpop.eup %3399  ;;  %v1577_v43 = vpop.xlane.xlu1 %1576  ;;  %v1589_v47 = vmul.f32 %v3398_v41, %v4122_v58  ;;  %v1926_v41 = vld [vmem:[%s4364_s29 + $0x8] sm:$0xff] }
 0x52d   :  { %3409 = vrcp.f32 %v1577_v43  ;;  %v1591_v48 = vmul.f32 %v3400_v42, %v4124_v60  ;;  %v2024_v42 = vld [vmem:[%s4333_s13 + $0x20] sm:$0xff]  ;;  %v2025_v43 = vld [vmem:[%s4333_s13 + $0x28] sm:$0xff] }
 0x52e   :  { %3029 = vmatmul.mubr.msk.f32.gmra.mrb[58].mxu0 %vm1469_vm4, %v1589_v47  ;;  %v3312_v47 = vpack.c.bf16 %v2025_v43, %v2024_v42 }
 0x52f   :  { %v3402_v49 = vpop.eup %3401  ;;  %3031 = vmatprep.mubr.msk.f32.mxu0 %vm1469_vm4, %v1591_v48  ;;  %v2116_v48 = vld [vmem:[%s4335_s15] sm:$0xff] }
 0x530   :  { %v3404_v45 = vpop.eup %3403  ;;  %v1593_v50 = vmul.f32 %v3402_v49, %v4130_v61  ;;  %v2117_v49 = vld [vmem:[%s4335_s15 + $0x8] sm:$0xff] }
 0x531   :  { %v1595_v51 = vmul.f32 %v3404_v45, %v4132_v1  ;;  %v2118_v45 = vld [vmem:[%s4335_s15 + $0x10] sm:$0xff] }
 0x532   :  { %3032 = vmatmul.mubr.msk.f32.gmra.mrb[60].mxu0 %vm1469_vm4, %v1593_v50  ;;  %v3316_v50 = vpack.c.bf16 %v2117_v49, %v2116_v48 }
 0x533   :  { %v3406_v52 = vpop.eup %3405  ;;  %3034 = vmatprep.mubr.msk.f32.mxu0 %vm1469_vm4, %v1595_v51  ;;  %v2119_v51 = vld [vmem:[%s4335_s15 + $0x18] sm:$0xff] }
 0x534   :  { %v3408_v53 = vpop.eup %3407  ;;  %v1597_v55 = vmul.f32 %v3406_v52, %v4138_v6  ;;  %v3320_v52 = vpack.c.bf16 %v2119_v51, %v2118_v45  ;;  %3317 = vmatprep.subr.bf16.mxu0 %v3316_v50 }
 0x535   :  { %v1599_v56 = vmul.f32 %v3408_v53, %v4140_v7  ;;  %v2120_v53 = vld [vmem:[%s4335_s15 + $0x20] sm:$0xff] }
 0x536   :  { %3035 = vmatmul.mubr.msk.f32.gmra.mrb[62].mxu0 %vm1469_vm4, %v1597_v55  ;;  %v2121_v55 = vld [vmem:[%s4335_s15 + $0x28] sm:$0xff] }
 0x537   :  { %v3410_v54 = vpop.eup %3409  ;;  %3037 = vmatprep.mubr.msk.f32.mxu0 %vm1469_vm4, %v1599_v56  ;;  %v3324_v56 = vpack.c.bf16 %v2121_v55, %v2120_v53  ;;  %v2525_v55 = vld [vmem:[%s4339_s19] ss:$0 sm:$0xff] }
 0x538   :  { %v1601_v57 = vmul.f32 %v3410_v54, %v4146_v29 }
 0x53a   :  { %3038 = vmatmul.mubr.msk.f32.gmra.mrb[64].mxu0 %vm1469_vm4, %v1601_v57 }
 0x5f9   :  { %v3024_v58 = vpop.f32.mrb[54].mxu0 }
 0x5fa   :  { %v1704_v59 = vpop.f32.mrb[55].mxu0 }
 0x5fb   :  { %3042 = vmatprep.mubr.msk.f32.mxu0 %vm1271_vm2, %v1704_v59  ;;  %v2213_v59 = vld [vmem:[%s4337_s17 + $0x8] sm:$0xff] }
 0x5fc   :  { %3043 = vmatmul.mubr.msk.f32.vlgmr.msra.gmra.mrb[66].mxu0 %vm1271_vm2, %v3024_v58  ;;  %v2212_v58 = vld [vmem:[%s4337_s17] sm:$0xff] }
 0x5fd   :  { %v3027_v60 = vpop.f32.mrb[56].mxu0  ;;  %3319 = vmatpush3.bf16.msra.mxu0 %v3316_v50 }
 0x5fe   :  { %v1714_v63 = vpop.f32.mrb[57].mxu0  ;;  %3321 = vmatprep.subr.bf16.mxu0 %v3320_v52 }
 0x5ff   :  { %3045 = vmatprep.mubr.msk.f32.mxu0 %vm1271_vm2, %v1714_v63  ;;  %v3328_v63 = vpack.c.bf16 %v2213_v59, %v2212_v58  ;;  %v2526_v58 = vld [vmem:[%s4365_s25] ss:$0 sm:$0xff] }
 0x600   :  { %3046 = vmatmul.mubr.msk.f32.gmra.mrb[68].mxu0 %vm1271_vm2, %v3027_v60  ;;  %v2214_v60 = vld [vmem:[%s4337_s17 + $0x10] sm:$0xff] }
 0x601   :  { %v3030_v0 = vpop.f32.mrb[58].mxu0  ;;  %3323 = vmatpush3.bf16.msra.mxu0 %v3320_v52 }
 0x602   :  { %v1724_v61 = vpop.f32.mrb[59].mxu0  ;;  %3325 = vmatprep.subr.bf16.mxu0 %v3324_v56 }
 0x603   :  { %3048 = vmatprep.mubr.msk.f32.mxu0 %vm1271_vm2, %v1724_v61 }
 0x604   :  { %3049 = vmatmul.mubr.msk.f32.gmra.mrb[70].mxu0 %vm1271_vm2, %v3030_v0  ;;  %v2215_v0 = vld [vmem:[%s4337_s17 + $0x18] sm:$0xff] }
 0x605   :  { %v3033_v1 = vpop.f32.mrb[60].mxu0  ;;  %3327 = vmatpush3.bf16.msra.mxu0 %v3324_v56  ;;  %v3332_v61 = vpack.c.bf16 %v2215_v0, %v2214_v60 }
 0x606   :  { %v1734_v3 = vpop.f32.mrb[61].mxu0 }
 0x607   :  { %3051 = vmatprep.mubr.msk.f32.mxu0 %vm1271_vm2, %v1734_v3  ;;  %v2217_v3 = vld [vmem:[%s4337_s17 + $0x28] sm:$0xff] }
 0x608   :  { %3052 = vmatmul.mubr.msk.f32.gmra.mrb[72].mxu0 %vm1271_vm2, %v3033_v1  ;;  %v2216_v1 = vld [vmem:[%s4337_s17 + $0x20] sm:$0xff] }
 0x609   :  { %v3036_v5 = vpop.f32.mrb[62].mxu0 }
 0x60a   :  { %v1744_v6 = vpop.f32.mrb[63].mxu0 }
 0x60b   :  { %3054 = vmatprep.mubr.msk.f32.mxu0 %vm1271_vm2, %v1744_v6  ;;  %v2218_v6 = vld [vmem:[%s4337_s17 + $0x30] sm:$0xff] }
 0x60c   :  { %3055 = vmatmul.mubr.msk.f32.gmra.mrb[74].mxu0 %vm1271_vm2, %v3036_v5  ;;  %v3336_v5 = vpack.c.bf16 %v2217_v3, %v2216_v1 }
 0x60d   :  { %v3039_v7 = vpop.f32.mrb[64].mxu0 }
 0x60e   :  { %v1754_v8 = vpop.f32.mrb[65].mxu0 }
 0x60f   :  { %3057 = vmatprep.mubr.msk.f32.mxu0 %vm1271_vm2, %v1754_v8 }
 0x610   :  { %3058 = vmatmul.mubr.msk.f32.gmra.mrb[76].mxu0 %vm1271_vm2, %v3039_v7  ;;  %v2219_v7 = vld [vmem:[%s4337_s17 + $0x38] sm:$0xff] }
 0x611   :  { %v3340_v8 = vpack.c.bf16 %v2219_v7, %v2218_v6 }
 0x6cf   :  { %v3044_v29 = vpop.f32.mrb[66].mxu0 }
 0x6d0   :  { %v1928_v11 = vmul.f32 %v3044_v29, %v3826_v4  ;;  %v1866_v14 = vpop.f32.mrb[67].mxu0  ;;  %v2221_v29 = vld [vmem:[%s4337_s17 + $0x48] sm:$0xff] }
 0x6d1   :  { %v1927_v16 = vmul.f32 %v1866_v14, %v3821_v2  ;;  %v2516_v14 = vld [vmem:[%s4334_s14] ss:$0 sm:$0xff] }
 0x6d3   :  { %v3280_v34 = vpack.c.bf16 %v1928_v11, %v1927_v16  ;;  %v3047_v17 = vpop.f32.mrb[68].mxu0  ;;  %v3344_v11 = vpack.c.bf16 %v2221_v29, %v2220_v9 }
 0x6d4   :  { %v1930_v19 = vmul.f32 %v3047_v17, %v3838_v12  ;;  %v1876_v22 = vpop.f32.mrb[69].mxu0 }
 0x6d5   :  { %v1929_v24 = vmul.f32 %v1876_v22, %v3833_v10  ;;  %3281 = vmatprep.subr.bf16.mxu1 %v3280_v34  ;;  %v3415_v22 = vld [vmem:[#allocation2] sm:$0xff] }
 0x6d6   :  { %3283 = vmatpush3.bf16.msra.mxu1 %v3280_v34 }
 0x6d7   :  { %v3284_v25 = vpack.c.bf16 %v1930_v19, %v1929_v24  ;;  %v3050_v62 = vpop.f32.mrb[70].mxu0 }
 0x6d8   :  { %v1932_v13 = vmul.f32 %v3050_v62, %v3854_v20  ;;  %v1886_v27 = vpop.f32.mrb[71].mxu0 }
 0x6d9   :  { %v1931_v21 = vmul.f32 %v1886_v27, %v3848_v18  ;;  %3285 = vmatprep.subr.bf16.mxu1 %v3284_v25  ;;  %v2223_v27 = vld [vmem:[%s4337_s17 + $0x58] sm:$0xff] }
 0x6da   :  { %3287 = vmatpush3.bf16.msra.mxu1 %v3284_v25  ;;  %v3416_v25 = vld [vmem:[#allocation2 + $0x8] sm:$0xff] }
 0x6db   :  { %v3288_v4 = vpack.c.bf16 %v1932_v13, %v1931_v21  ;;  %v3053_v2 = vpop.f32.mrb[72].mxu0  ;;  %v2222_v13 = vld [vmem:[%s4337_s17 + $0x50] sm:$0xff] }
 0x6dc   :  { %v1934_v15 = vmul.f32 %v3053_v2, %v3870_v28  ;;  %v1896_v32 = vpop.f32.mrb[73].mxu0  ;;  %v2021_v28 = vld [vmem:[%s4333_s13 + $0x8] sm:$0xff]  ;;  %v3348_v21 = vpack.c.bf16 %v2223_v27, %v2222_v13 }
 0x6dd   :  { %v1933_v12 = vmul.f32 %v1896_v32, %v3864_v26  ;;  %3289 = vmatprep.subr.bf16.mxu1 %v3288_v4  ;;  %v2020_v26 = vld [vmem:[%s4333_s13] sm:$0xff] }
 0x6de   :  { %3291 = vmatpush3.bf16.msra.mxu1 %v3288_v4  ;;  %v3304_v33 = vpack.c.bf16 %v2021_v28, %v2020_v26  ;;  %v2519_v4 = vld [vmem:[%s4336_s16] ss:$0 sm:$0xff] }
 0x6df   :  { %v3292_v10 = vpack.c.bf16 %v1934_v15, %v1933_v12  ;;  %v3056_v35 = vpop.f32.mrb[74].mxu0 }
 0x6e0   :  { %v1936_v37 = vmul.f32 %v3056_v35, %v3886_v38  ;;  %v1906_v23 = vpop.f32.mrb[75].mxu0 }
 0x6e1   :  { %v1935_v20 = vmul.f32 %v1906_v23, %v3880_v36  ;;  %3293 = vmatprep.subr.bf16.mxu1 %v3292_v10 }
 0x6e2   :  { %3295 = vmatpush3.bf16.msra.mxu1 %v3292_v10 }
 0x6e3   :  { %v3296_v18 = vpack.c.bf16 %v1936_v37, %v1935_v20  ;;  %v3059_v30 = vpop.f32.mrb[76].mxu0  ;;  %v2522_v37 = vld [vmem:[%s4338_s18] ss:$0 sm:$0xff] }
 0x6e4   :  { %v1938_v31 = vmul.f32 %v3059_v30, %v3900_v46  ;;  %v1916_v40 = vpop.f32.mrb[77].mxu0  ;;  %v2023_v46 = vld [vmem:[%s4333_s13 + $0x18] sm:$0xff] }
 0x6e5   :  { %v1937_v38 = vmul.f32 %v1916_v40, %v3895_v44  ;;  %3297 = vmatprep.subr.bf16.mxu1 %v3296_v18  ;;  %v3308_v44 = vpack.c.bf16 %v2023_v46, %v2022_v39 }
 0x6e6   :  { %3299 = vmatpush3.bf16.msra.mxu1 %v3296_v18 }
 0x6e7   :  { %v3300_v36 = vpack.c.bf16 %v1938_v31, %v1937_v38 }
 0x6e9   :  { %3301 = vmatprep.subr.bf16.mxu1 %v3300_v36 }
 0x6ea   :  { %3303 = vmatpush3.bf16.msra.mxu1 %v3300_v36 }
 0x6eb   :  { %3305 = vmatprep.subr.bf16.mxu1 %v3304_v33 }
 0x6ed   :  { %3085 = vmatmul.mubr.msk.f32.vlgmr.msra.gmra.mrb[42].mxu1 %vm1469_vm4, %v1926_v41 }
 0x6ee   :  { %3307 = vmatpush3.bf16.msra.mxu1 %v3304_v33 }
 0x6ef   :  { %3309 = vmatprep.subr.bf16.mxu1 %v3308_v44 }
 0x6f2   :  { %3311 = vmatpush3.bf16.msra.mxu1 %v3308_v44 }
 0x6f3   :  { %3313 = vmatprep.subr.bf16.mxu1 %v3312_v47 }
 0x6f6   :  { %3315 = vmatpush3.bf16.msra.mxu1 %v3312_v47 }
 0x6f7   :  { %3329 = vmatprep.subr.bf16.mxu1 %v3328_v63 }
 0x7c0   :  { %v3086_v54 = vpop.f32.mrb[42].mxu1 }
 0x7c1   :  { %v2011_v57 = vpop.f32.mrb[43].mxu1 }
 0x7c2   :  { %3099 = vmatprep.mubr.msk.f32.mxu1 %vm302_vm1, %v2011_v57 }
 0x7c3   :  { %3100 = vmatmul.mubr.msk.f32.vlgmr.msra.gmra.mrb[44].mxu1 %vm302_vm1, %v3086_v54 }
 0x7c4   :  { %3331 = vmatpush3.bf16.msra.mxu1 %v3328_v63 }
 0x7c5   :  { %3333 = vmatprep.subr.bf16.mxu1 %v3332_v61 }
 0x7c8   :  { %3335 = vmatpush3.bf16.msra.mxu1 %v3332_v61 }
 0x7c9   :  { %3337 = vmatprep.subr.bf16.mxu1 %v3336_v5 }
 0x7cc   :  { %3339 = vmatpush3.bf16.msra.mxu1 %v3336_v5 }
 0x7cd   :  { %3341 = vmatprep.subr.bf16.mxu1 %v3340_v8 }
 0x7d0   :  { %3343 = vmatpush3.bf16.msra.mxu1 %v3340_v8 }
 0x7d1   :  { %3345 = vmatprep.subr.bf16.mxu1 %v3344_v11 }
 0x7d4   :  { %3347 = vmatpush3.bf16.msra.mxu1 %v3344_v11 }
 0x7d5   :  { %3349 = vmatprep.subr.bf16.mxu1 %v3348_v21 }
 0x7d8   :  { %3351 = vmatpush3.bf16.msra.mxu1 %v3348_v21 }
 0x896   :  { %v3101_v16 = vpop.f32.mrb[44].mxu1 }
 0x897   :  { %v2111_v34 = vadd.f32 %v3101_v16, %v2516_v14  ;;  %v2105_v17 = vpop.f32.mrb[45].mxu1 }
 0x898   :  { %v2106_v19 = vadd.f32 %v2516_v14, %v2105_v17 }
 0x899   :  { %v2115_v62 = vadd.f32 %v3416_v25, %v2111_v34 }
 0x89a   :  { %v2114_v24 = vadd.f32 %v3415_v22, %v2106_v19 }
 0x89c   :  { %3114 = vmatprep.mubr.msk.f32.mxu0 %vm302_vm1, %v2114_v24 }
 0x89d   :  { %3115 = vmatmul.mubr.msk.f32.vlgmr.msra.gmra.mrb[78].mxu0 %vm302_vm1, %v2115_v62 }
 0x970   :  { %v3116_v2 = vpop.f32.mrb[78].mxu0 }
 0x971   :  { %v2207_v15 = vadd.f32 %v3116_v2, %v2519_v4  ;;  %v2201_v32 = vpop.f32.mrb[79].mxu0 }
 0x972   :  { %v2202_v12 = vadd.f32 %v2519_v4, %v2201_v32 }
 0x973   :  { %v2211_v35 = vmax.f32 %v2207_v15, 0.0 }
 0x974   :  { %v2210_v10 = vmax.f32 %v2202_v12, 0.0 }
 0x976   :  { %3141 = vmatprep.mubr.msk.f32.mxu1 %vm1469_vm4, %v2210_v10 }
 0x977   :  { %3142 = vmatmul.mubr.msk.f32.vlgmr.msra.gmra.mrb[46].mxu1 %vm1469_vm4, %v2211_v35 }
 0xa4a   :  { %v3143_v23 = vpop.f32.mrb[46].mxu1 }
 0xa4b   :  { %v2309_v20 = vadd.f32 %v3143_v23, %v2522_v37  ;;  %v2303_v18 = vpop.f32.mrb[47].mxu1 }
 0xa4c   :  { %v2304_v30 = vadd.f32 %v2522_v37, %v2303_v18 }
 0xa4d   :  { %v2313_v31 = vadd.f32 %v2309_v20, %v2115_v62 }
 0xa4e   :  { %v2312_v40 = vadd.f32 %v2304_v30, %v2114_v24 }
 0xa4f   :  { %v2317_v26 = vsel %vm302_vm1, %v2313_v31, 0.0 }
 0xa50   :  { %2318 = vadd.xlane.f32.xlu1 %v2317_v26  ;;  %v2314_v28 = vsel %vm302_vm1, %v2312_v40, 0.0 }
 0xa51   :  { %2315 = vadd.xlane.f32.xlu0 %v2314_v28 }
 0xadd   :  { %v2319_v38 = vpop.xlane.xlu1 %2318 }
 0xade   :  { %v2322_v36 = vmul.f32 0.020833334, %v2319_v38  ;;  %v2316_v33 = vpop.xlane.xlu0 %2315 }
 0xadf   :  { %v2321_v39 = vmul.f32 0.020833334, %v2316_v33 }
 0xae0   :  { %v2324_v46 = vsub.f32 %v2313_v31, %v2322_v36 }
 0xae1   :  { %v2323_v41 = vsub.f32 %v2312_v40, %v2321_v39 }
 0xae2   :  { %v2326_v44 = vmul.f32 %v2324_v46, %v2324_v46 }
 0xae3   :  { %v2325_v42 = vmul.f32 %v2323_v41, %v2323_v41 }
 0xae4   :  { %v2330_v43 = vsel %vm302_vm1, %v2326_v44, 0.0 }
 0xae5   :  { %2331 = vadd.xlane.f32.xlu1 %v2330_v43  ;;  %v2327_v47 = vsel %vm302_vm1, %v2325_v42, 0.0 }
 0xae6   :  { %2328 = vadd.xlane.f32.xlu0 %v2327_v47 }
 0xb72   :  { %v2332_v48 = vpop.xlane.xlu1 %2331 }
 0xb73   :  { %v2334_v49 = vmul.f32 0.020833334, %v2332_v48  ;;  %v2329_v45 = vpop.xlane.xlu0 %2328 }
 0xb74   :  { %v2333_v50 = vmul.f32 0.020833334, %v2329_v45 }
 0xb75   :  { %v2336_v51 = vadd.f32 1e-05, %v2334_v49 }
 0xb76   :  { %v2335_v52 = vadd.f32 1e-05, %v2333_v50 }
 0xb77   :  { %3411 = vrsqrt.f32 %v2336_v51 }
 0xb78   :  { %3413 = vrsqrt.f32 %v2335_v52 }
 0xb81   :  { %v3412_v53 = vpop.eup %3411 }
 0xb82   :  { %v3414_v56 = vpop.eup %3413  ;;  %v2340_v54 = vmul.f32 %v3412_v53, %v2324_v46 }
 0xb83   :  { %v2339_v57 = vmul.f32 %v3414_v56, %v2323_v41 }
 0xb84   :  { %v2349_v59 = vmul.f32 %v2525_v55, %v2340_v54 }
 0xb85   :  { %v2348_v60 = vmul.f32 %v2525_v55, %v2339_v57 }
 0xb86   :  { %v2358_v63 = vadd.f32 %v2526_v58, %v2349_v59 }
 0xb87   :  { %v2357_v0 = vadd.f32 %v2526_v58, %v2348_v60 }
 0xb88   :  { %2360 = vst.msk [vmem:[#allocation7 + $0x8] sm:$0xff] %vm302_vm1, %v2358_v63 }
 0xb89   :  { %2359 = vst.msk [vmem:[#allocation7] sm:$0xff] %vm302_vm1, %v2357_v0 }
 0xb8a   :  { %3472 = shalt.err (!%p3469_p6)
}
 0xb8b   :  { %s4366_s2 = sld [smem:[#allocation18_spill]] }
 0xb91   :  { %s3473_s10 = scalar_lea.hbm %s4366_s2, 256 }
 0xb92   :  { %p3474_p7 = scmp.ne.s32.totalorder %s4366_s2, %s3473_s10  ;;  %p3477_p8 = scmp.lt.u32.totalorder %s3473_s10, %s4366_s2 }
 0xb94   :  { %p3479_p9 = pnand %p3477_p8, %p3474_p7 }
 0xb96   :  { %3482 = shalt.err (!%p3479_p9)
}
 0xb97   :  { %2372 = dma.vmem_to_hbm [thread:$0]  %s2367_s8, 256, %s4366_s2, [#allocation4], %s3490_s22, %s3490_s22, %s3491_s23  }
 0xb98   :  { %3487 = dma.done.wait [#allocation4], 256  }
 0xb99   :  { %3488 = vsyncadd [#allocation4], 4294967040 }
 0xb9a   :  { %2376 = vsyncpa [#allocation3], 1 }
 0xb9b   :  { %2377 = vsyncpa [#allocation6], 1 }
 0xb9c   :  { %2378 = vsyncpa [#allocation4], 1 }

</bundles_post_ra>
